<compile_context>
chip_gen: v5e
topology: v5e:2x2
jax: 0.10.0
libtpu: 0.0.40
codegen_flags: <defaults>
</compile_context>

<pallas_src>
import functools

import jax
import jax.numpy as jnp
from jax.experimental import pallas as pl
from jax.experimental.pallas import tpu as pltpu


# ----------------------------------------------------------------------------
# Pallas kernel: one batch tile; all parameters VMEM/SMEM resident.
# ----------------------------------------------------------------------------
def _mtl_kernel(ux_ref, ix_ref, w1u_ref, w1i_ref, w2_ref, w3_ref, wa_ref,
                vec_ref, scal_ref, out_ref, *, h1, h2, emb):
    f32 = jnp.float32
    ux = ux_ref[...]                                              # (TB, Du)
    ix = ix_ref[...]                                              # (TB, Di)

    # Fused tower layer 1 (BN folded). W1 is block-diagonal, so the reference's
    # concat([ux, ix]) @ W1 is exactly two dots accumulating into one 2*h1 slab.
    h = (jnp.dot(ux, w1u_ref[...], preferred_element_type=f32)
         + jnp.dot(ix, w1i_ref[...], preferred_element_type=f32))
    h = jnp.maximum(h + vec_ref[0:1, :2 * h1], 0.0)               # (TB, 2*h1)

    # Fused tower layer 2 (BN folded) + ReLU                      -> (TB, 2*h2)
    h = jnp.dot(h.astype(w2_ref.dtype), w2_ref[...], preferred_element_type=f32)
    h = jnp.maximum(h + vec_ref[1:2, :2 * h2], 0.0)

    # Fused embedding layer                                       -> (TB, 2*emb)
    e = jnp.dot(h.astype(w3_ref.dtype), w3_ref[...], preferred_element_type=f32)
    e = e + vec_ref[2:3, :2 * emb]                                # [e_user | e_item]

    # Per-tower LayerNorm (eps=1e-5) + L2 normalize (eps=1e-12), all in f32.
    def _ln_l2(z, g, b):
        mu = jnp.mean(z, axis=-1, keepdims=True)
        var = jnp.mean((z - mu) * (z - mu), axis=-1, keepdims=True)
        z = (z - mu) * jax.lax.rsqrt(var + 1e-5) * g + b
        nrm = jnp.sqrt(jnp.sum(z * z, axis=-1, keepdims=True))
        return z / jnp.maximum(nrm, 1e-12)

    ln_g = vec_ref[3:4, :2 * emb]
    ln_b = vec_ref[4:5, :2 * emb]
    u = _ln_l2(e[:, :emb], ln_g[:, :emb], ln_b[:, :emb])          # (TB, emb)
    it = _ln_l2(e[:, emb:2 * emb], ln_g[:, emb:2 * emb], ln_b[:, emb:2 * emb])

    inv_temp = scal_ref[0]
    sim = jnp.sum(u * it, axis=-1, keepdims=True) * inv_temp      # (TB, 1)

    # Fused task heads. First Linear: comb @ [Wa_rating | Wa_click] as two dots
    # (no concat([u, it]) materialized).
    hh = (jnp.dot(u.astype(wa_ref.dtype), wa_ref[:emb, :], preferred_element_type=f32)
          + jnp.dot(it.astype(wa_ref.dtype), wa_ref[emb:, :], preferred_element_type=f32)
          + vec_ref[5:6, :2 * emb])
    hh = jnp.maximum(hh, 0.0)                                     # (TB, 2*emb) = [h_r | h_c]

    # Second Linear of each head is (emb -> 1): VPU row reductions.
    prod = hh * vec_ref[6:7, :2 * emb]                            # row 6 = [wb_r | wb_c]
    logit_r = jnp.sum(prod[:, :emb], axis=-1, keepdims=True) + scal_ref[1]
    logit_c = jnp.sum(prod[:, emb:2 * emb], axis=-1, keepdims=True) + scal_ref[2]

    rating = jax.nn.sigmoid(logit_r) * 5.0
    click = jax.nn.sigmoid(logit_c)

    # Narrow (TB, 8) output: col0=sim, col1=rating, col2=click, rest 0.
    cols = jax.lax.broadcasted_iota(jnp.int32, out_ref.shape, 1)
    out_ref[...] = jnp.where(cols == 0, sim,
                   jnp.where(cols == 1, rating,
                   jnp.where(cols == 2, click, 0.0)))


# ----------------------------------------------------------------------------
# Wrapper
# ----------------------------------------------------------------------------
def _round_up(x, m):
    return (x + m - 1) // m * m


@functools.partial(jax.jit, static_argnames=("h1", "h2", "emb", "tile_b"))
def multitask_two_tower(user_x, item_x, packed, *, h1, h2, emb, tile_b=256):
    assert tile_b % 16 == 0, "tile_b must be a multiple of 16"
    w1u, w1i, w2, w3, wa, vec, scal = packed
    B, du = user_x.shape
    di = item_x.shape[1]

    # Match activation dtype to the packed weight I/O dtype (no-op on the f32 path;
    # in production callers should pass bf16 activations directly).
    io_dtype = w1u.dtype
    user_x = user_x.astype(io_dtype)
    item_x = item_x.astype(io_dtype)

    # Large batch tiles amortize per-step overhead and fill the MXU M dimension;
    # small / ragged batches are padded up to a tile multiple instead of shrinking tiles.
    tb = min(tile_b, _round_up(B, 16))
    b_pad = _round_up(B, tb)
    if b_pad != B:
        user_x = jnp.pad(user_x, ((0, b_pad - B), (0, 0)))
        item_x = jnp.pad(item_x, ((0, b_pad - B), (0, 0)))

    flops = 2 * b_pad * (du * 2 * h1 + di * 2 * h1
                         + (2 * h1) * (2 * h2) + (2 * h2) * (2 * emb)
                         + (2 * emb) * (2 * emb))
    bytes_in = (user_x.size + item_x.size) * user_x.dtype.itemsize
    bytes_w = sum(a.size * a.dtype.itemsize for a in (w1u, w1i, w2, w3, wa, vec, scal))
    bytes_out = b_pad * 8 * 4

    kernel = functools.partial(_mtl_kernel, h1=h1, h2=h2, emb=emb)
    out = pl.pallas_call(
        kernel,
        out_shape=jax.ShapeDtypeStruct((b_pad, 8), jnp.float32),
        grid=(b_pad // tb,),
        in_specs=[
            pl.BlockSpec((tb, du), lambda b: (b, 0)),             # batch-tiled user features
            pl.BlockSpec((tb, di), lambda b: (b, 0)),             # batch-tiled item features
            pl.BlockSpec(w1u.shape, lambda b: (0, 0)),            # resident weights
            pl.BlockSpec(w1i.shape, lambda b: (0, 0)),
            pl.BlockSpec(w2.shape, lambda b: (0, 0)),
            pl.BlockSpec(w3.shape, lambda b: (0, 0)),
            pl.BlockSpec(wa.shape, lambda b: (0, 0)),
            pl.BlockSpec(vec.shape, lambda b: (0, 0)),            # packed bias/LN/head vectors
            pl.BlockSpec(memory_space=pltpu.MemorySpace.SMEM),    # [inv_temp, bb_r, bb_c, 0]
        ],
        out_specs=pl.BlockSpec((tb, 8), lambda b: (b, 0)),        # narrow output slab
        compiler_params=pltpu.CompilerParams(
            dimension_semantics=("parallel",)),
        cost_estimate=pl.CostEstimate(flops=flops,
                                      transcendentals=8 * b_pad,
                                      bytes_accessed=bytes_in + bytes_w + bytes_out),
    )(user_x, item_x, w1u, w1i, w2, w3, wa, vec, scal)

    return {
        "similarity": out[:B, 0],
        "rating": out[:B, 1:2],
        "click": out[:B, 2:3],
    }


# ----------------------------------------------------------------------------
# Parameter construction (matches PyTorch module shapes; weights stored (in, out))
# ----------------------------------------------------------------------------
def make_raw_params(key, user_dim, item_dim, hidden, emb):
    h1, h2 = hidden
    ks = iter(jax.random.split(key, 64))

    def xavier(k, fi, fo):
        return jax.random.normal(k, (fi, fo), jnp.float32) * ((2.0 / (fi + fo)) ** 0.5)

    def small(k, n, scale=0.05):
        return jax.random.normal(k, (n,), jnp.float32) * scale

    def bn(n):  # (gamma, beta, running_mean, running_var) -- eval-mode stats
        return (1.0 + small(next(ks), n, 0.1), small(next(ks), n, 0.1),
                small(next(ks), n, 0.1),
                1.0 + 0.2 * jax.random.uniform(next(ks), (n,), jnp.float32))

    def tower(in_dim):
        return (xavier(next(ks), in_dim, h1), small(next(ks), h1), bn(h1),
                xavier(next(ks), h1, h2), small(next(ks), h2), bn(h2),
                xavier(next(ks), h2, emb), small(next(ks), emb),
                1.0 + small(next(ks), emb, 0.1), small(next(ks), emb, 0.1))

    def head():
        return (xavier(next(ks), 2 * emb, emb), small(next(ks), emb),
                xavier(next(ks), emb, 1), small(next(ks), 1))

    return {
        "user": tower(user_dim),
        "item": tower(item_dim),
        "rating": head(),
        "click": head(),
        "temperature": jnp.full((1,), 0.1, jnp.float32),
    }


def pack_params(raw, user_dim, item_dim, h1, h2, emb, io_dtype=jnp.bfloat16):
    """Fold eval-BN into linears, build fused block-diagonal weights + packed vectors."""
    def fold(W, b, bn_p):
        g, beta, m, v = bn_p
        s = g / jnp.sqrt(v + 1e-5)
        return W * s[None, :], b * s + (beta - m * s)

    uW1, ub1, ubn1, uW2, ub2, ubn2, uW3, ub3, ulg, ulb = raw["user"]
    iW1, ib1, ibn1, iW2, ib2, ibn2, iW3, ib3, ilg, ilb = raw["item"]
    W1u_f, b1u = fold(uW1, ub1, ubn1)
    W1i_f, b1i = fold(iW1, ib1, ibn1)
    W2u, b2u = fold(uW2, ub2, ubn2)
    W2i, b2i = fold(iW2, ib2, ibn2)

    # Layer-1: per-feature-block slabs feeding one fused 2*h1-wide output (no input concat).
    W1u = jnp.zeros((user_dim, 2 * h1), jnp.float32).at[:, :h1].set(W1u_f)
    W1i = jnp.zeros((item_dim, 2 * h1), jnp.float32).at[:, h1:].set(W1i_f)
    W2 = jnp.zeros((2 * h1, 2 * h2), jnp.float32)
    W2 = W2.at[:h1, :h2].set(W2u).at[h1:, h2:].set(W2i)
    W3 = jnp.zeros((2 * h2, 2 * emb), jnp.float32)
    W3 = W3.at[:h2, :emb].set(uW3).at[h2:, emb:].set(iW3)

    rWa, rba, rWb, rbb = raw["rating"]
    cWa, cba, cWb, cbb = raw["click"]
    Wa = jnp.concatenate([rWa, cWa], axis=1)                      # (2E, 2E)

    vec_w = max(128, -(-max(2 * h1, 2 * h2, 2 * emb) // 128) * 128)
    vec = jnp.zeros((8, vec_w), jnp.float32)
    vec = vec.at[0, :2 * h1].set(jnp.concatenate([b1u, b1i]))
    vec = vec.at[1, :2 * h2].set(jnp.concatenate([b2u, b2i]))
    vec = vec.at[2, :2 * emb].set(jnp.concatenate([ub3, ib3]))
    vec = vec.at[3, :2 * emb].set(jnp.concatenate([ulg, ilg]))
    vec = vec.at[4, :2 * emb].set(jnp.concatenate([ulb, ilb]))
    vec = vec.at[5, :2 * emb].set(jnp.concatenate([rba, cba]))
    vec = vec.at[6, :2 * emb].set(jnp.concatenate([rWb[:, 0], cWb[:, 0]]))

    scal = jnp.stack([1.0 / raw["temperature"][0], rbb[0], cbb[0],
                      jnp.float32(0.0)]).astype(jnp.float32)      # SMEM scalars

    # Big matmul slabs in the I/O dtype; numerics-sensitive small vectors stay f32.
    return (W1u.astype(io_dtype), W1i.astype(io_dtype), W2.astype(io_dtype),
            W3.astype(io_dtype), Wa.astype(io_dtype), vec, scal)


# ----------------------------------------------------------------------------
# Pure-JAX reference on the ORIGINAL (unfused, unfolded, f32) parameters
# ----------------------------------------------------------------------------
def reference(user_x, item_x, raw):
    def tower(x, p):
        W1, b1, (g1, be1, m1, v1), W2, b2, (g2, be2, m2, v2), W3, b3, lg, lb = p
        h = x @ W1 + b1
        h = jnp.maximum((h - m1) / jnp.sqrt(v1 + 1e-5) * g1 + be1, 0.0)
        h = h @ W2 + b2
        h = jnp.maximum((h - m2) / jnp.sqrt(v2 + 1e-5) * g2 + be2, 0.0)
        e = h @ W3 + b3
        mu = e.mean(-1, keepdims=True)
        var = ((e - mu) ** 2).mean(-1, keepdims=True)
        e = (e - mu) / jnp.sqrt(var + 1e-5) * lg + lb
        n = jnp.sqrt((e * e).sum(-1, keepdims=True))
        return e / jnp.maximum(n, 1e-12)

    def head(z, p):
        Wa, ba, Wb, bb = p
        return jnp.maximum(z @ Wa + ba, 0.0) @ Wb + bb

    u = tower(user_x, raw["user"])
    it = tower(item_x, raw["item"])
    sim = (u * it).sum(-1) / raw["temperature"][0]
    comb = jnp.concatenate([u, it], axis=-1)
    return {
        "similarity": sim,
        "rating": jax.nn.sigmoid(head(comb, raw["rating"])) * 5.0,
        "click": jax.nn.sigmoid(head(comb, raw["click"])),
    }


if __name__ == "__main__":
    B = 48
    USER_DIM, ITEM_DIM = 40, 24
    HIDDEN = (64, 32)
    EMB = 32

    key = jax.random.PRNGKey(0)
    k_u, k_i, k_p = jax.random.split(key, 3)
    user_x = jax.random.normal(k_u, (B, USER_DIM), dtype=jnp.float32)
    item_x = jax.random.normal(k_i, (B, ITEM_DIM), dtype=jnp.float32)

    raw = make_raw_params(k_p, USER_DIM, ITEM_DIM, HIDDEN, EMB)
    ref = reference(user_x, item_x, raw)

    # 1) Exactness check: f32 I/O; tile smaller than batch so the multi-step grid and
    #    the batch-padding path (48 -> 64 rows, 2 parallel grid steps) are exercised.
    packed_f32 = pack_params(raw, USER_DIM, ITEM_DIM, HIDDEN[0], HIDDEN[1], EMB,
                             io_dtype=jnp.float32)
    out32 = multitask_two_tower(user_x, item_x, packed_f32,
                                h1=HIDDEN[0], h2=HIDDEN[1], emb=EMB, tile_b=32)
    out32 = jax.tree_util.tree_map(jax.block_until_ready, out32)
    for name, atol in (("similarity", 2e-3), ("rating", 1e-3), ("click", 1e-3)):
        assert out32[name].shape == ref[name].shape, name
        assert jnp.allclose(out32[name], ref[name], atol=atol, rtol=1e-3), name

    # 2) Fast path: bf16 activations/weights (f32 accumulation + f32 LN/L2/sigmoid),
    #    default large tile. Loose tolerances for bf16 I/O quantization.
    packed_bf16 = pack_params(raw, USER_DIM, ITEM_DIM, HIDDEN[0], HIDDEN[1], EMB,
                              io_dtype=jnp.bfloat16)
    out16 = multitask_two_tower(user_x, item_x, packed_bf16,
                                h1=HIDDEN[0], h2=HIDDEN[1], emb=EMB)
    out16 = jax.tree_util.tree_map(jax.block_until_ready, out16)
    for name, atol in (("similarity", 0.5), ("rating", 0.1), ("click", 0.05)):
        assert out16[name].shape == ref[name].shape, name
        assert jnp.allclose(out16[name], ref[name], atol=atol, rtol=0.05), name

    print("KERNEL_OK")
</pallas_src>

<mosaic_0001>
module attributes {stable_mosaic.version = 11 : i64} {
  func.func @_mtl_kernel(%arg0: i32, %arg1: memref<32x40xf32, #tpu.memory_space<vmem>>, %arg2: memref<32x24xf32, #tpu.memory_space<vmem>>, %arg3: memref<40x128xf32, #tpu.memory_space<vmem>>, %arg4: memref<24x128xf32, #tpu.memory_space<vmem>>, %arg5: memref<128x64xf32, #tpu.memory_space<vmem>>, %arg6: memref<64x64xf32, #tpu.memory_space<vmem>>, %arg7: memref<64x64xf32, #tpu.memory_space<vmem>>, %arg8: memref<8x128xf32, #tpu.memory_space<vmem>>, %arg9: memref<4xf32, #tpu.memory_space<smem>>, %arg10: memref<32x8xf32, #tpu.memory_space<vmem>>) attributes {dimension_semantics = [#tpu.dimension_semantics<parallel>], iteration_bounds = array<i64: 2>, scalar_prefetch = 0 : i64, scratch_operands = 0 : i64, tpu.core_type = #tpu.core_type<tc>, window_params = [{transform_indices = @transform_0, window_bounds = array<i64: 32, 40>}, {transform_indices = @transform_1, window_bounds = array<i64: 32, 24>}, {pipeline_mode = #tpu.pipeline_mode<synchronous>, transform_indices = @transform_2, window_bounds = array<i64: 40, 128>}, {pipeline_mode = #tpu.pipeline_mode<synchronous>, transform_indices = @transform_3, window_bounds = array<i64: 24, 128>}, {pipeline_mode = #tpu.pipeline_mode<synchronous>, transform_indices = @transform_4, window_bounds = array<i64: 128, 64>}, {pipeline_mode = #tpu.pipeline_mode<synchronous>, transform_indices = @transform_5, window_bounds = array<i64: 64, 64>}, {pipeline_mode = #tpu.pipeline_mode<synchronous>, transform_indices = @transform_6, window_bounds = array<i64: 64, 64>}, {pipeline_mode = #tpu.pipeline_mode<synchronous>, transform_indices = @transform_7, window_bounds = array<i64: 8, 128>}, {transform_indices = @transform_8, window_bounds = array<i64: 4>}, {transform_indices = @transform_9, window_bounds = array<i64: 32, 8>}]} {
    %c0 = arith.constant 0 : index
    %c0_0 = arith.constant 0 : index
    %0 = vector.load %arg1[%c0, %c0_0] : memref<32x40xf32, #tpu.memory_space<vmem>>, vector<32x40xf32>
    %c0_1 = arith.constant 0 : index
    %c0_2 = arith.constant 0 : index
    %1 = vector.load %arg2[%c0_1, %c0_2] : memref<32x24xf32, #tpu.memory_space<vmem>>, vector<32x24xf32>
    %c0_3 = arith.constant 0 : index
    %c0_4 = arith.constant 0 : index
    %2 = vector.load %arg3[%c0_3, %c0_4] : memref<40x128xf32, #tpu.memory_space<vmem>>, vector<40x128xf32>
    %cst = arith.constant dense<0.000000e+00> : vector<32x128xf32>
    %3 = tpu.matmul %0, %2, %cst {dimension_numbers = #tpu.dot_dimension_numbers<[1], [0], [0], [1], [0, 0, 1, 1], [], []>} : vector<32x40xf32>, vector<40x128xf32>, vector<32x128xf32> -> vector<32x128xf32>
    %c0_5 = arith.constant 0 : index
    %c0_6 = arith.constant 0 : index
    %4 = vector.load %arg4[%c0_5, %c0_6] : memref<24x128xf32, #tpu.memory_space<vmem>>, vector<24x128xf32>
    %cst_7 = arith.constant dense<0.000000e+00> : vector<32x128xf32>
    %5 = tpu.matmul %1, %4, %cst_7 {dimension_numbers = #tpu.dot_dimension_numbers<[1], [0], [0], [1], [0, 0, 1, 1], [], []>} : vector<32x24xf32>, vector<24x128xf32>, vector<32x128xf32> -> vector<32x128xf32>
    %6 = arith.addf %3, %5 : vector<32x128xf32>
    %c0_8 = arith.constant 0 : index
    %c0_9 = arith.constant 0 : index
    %7 = vector.load %arg8[%c0_8, %c0_9] : memref<8x128xf32, #tpu.memory_space<vmem>>, vector<1x128xf32>
    %8 = vector.broadcast %7 : vector<1x128xf32> to vector<32x128xf32>
    %9 = arith.addf %6, %8 : vector<32x128xf32>
    %cst_10 = arith.constant 0.000000e+00 : f32
    %10 = vector.broadcast %cst_10 : f32 to vector<32x128xf32>
    %11 = arith.maximumf %9, %10 : vector<32x128xf32>
    %c0_11 = arith.constant 0 : index
    %c0_12 = arith.constant 0 : index
    %12 = vector.load %arg5[%c0_11, %c0_12] : memref<128x64xf32, #tpu.memory_space<vmem>>, vector<128x64xf32>
    %cst_13 = arith.constant dense<0.000000e+00> : vector<32x64xf32>
    %13 = tpu.matmul %11, %12, %cst_13 {dimension_numbers = #tpu.dot_dimension_numbers<[1], [0], [0], [1], [0, 0, 1, 1], [], []>} : vector<32x128xf32>, vector<128x64xf32>, vector<32x64xf32> -> vector<32x64xf32>
    %c1 = arith.constant 1 : index
    %c0_14 = arith.constant 0 : index
    %14 = vector.load %arg8[%c1, %c0_14] : memref<8x128xf32, #tpu.memory_space<vmem>>, vector<1x64xf32>
    %15 = vector.broadcast %14 : vector<1x64xf32> to vector<32x64xf32>
    %16 = arith.addf %13, %15 : vector<32x64xf32>
    %cst_15 = arith.constant 0.000000e+00 : f32
    %17 = vector.broadcast %cst_15 : f32 to vector<32x64xf32>
    %18 = arith.maximumf %16, %17 : vector<32x64xf32>
    %c0_16 = arith.constant 0 : index
    %c0_17 = arith.constant 0 : index
    %19 = vector.load %arg6[%c0_16, %c0_17] : memref<64x64xf32, #tpu.memory_space<vmem>>, vector<64x64xf32>
    %cst_18 = arith.constant dense<0.000000e+00> : vector<32x64xf32>
    %20 = tpu.matmul %18, %19, %cst_18 {dimension_numbers = #tpu.dot_dimension_numbers<[1], [0], [0], [1], [0, 0, 1, 1], [], []>} : vector<32x64xf32>, vector<64x64xf32>, vector<32x64xf32> -> vector<32x64xf32>
    %c2 = arith.constant 2 : index
    %c0_19 = arith.constant 0 : index
    %21 = vector.load %arg8[%c2, %c0_19] : memref<8x128xf32, #tpu.memory_space<vmem>>, vector<1x64xf32>
    %22 = vector.broadcast %21 : vector<1x64xf32> to vector<32x64xf32>
    %23 = arith.addf %20, %22 : vector<32x64xf32>
    %c3 = arith.constant 3 : index
    %c0_20 = arith.constant 0 : index
    %24 = vector.load %arg8[%c3, %c0_20] : memref<8x128xf32, #tpu.memory_space<vmem>>, vector<1x64xf32>
    %c4 = arith.constant 4 : index
    %c0_21 = arith.constant 0 : index
    %25 = vector.load %arg8[%c4, %c0_21] : memref<8x128xf32, #tpu.memory_space<vmem>>, vector<1x64xf32>
    %26 = vector.extract_strided_slice %23 {offsets = [0, 0], sizes = [32, 32], strides = [1, 1]} : vector<32x64xf32> to vector<32x32xf32>
    %27 = vector.extract_strided_slice %24 {offsets = [0, 0], sizes = [1, 32], strides = [1, 1]} : vector<1x64xf32> to vector<1x32xf32>
    %28 = vector.extract_strided_slice %25 {offsets = [0, 0], sizes = [1, 32], strides = [1, 1]} : vector<1x64xf32> to vector<1x32xf32>
    %cst_22 = arith.constant dense<0.000000e+00> : vector<32xf32>
    %29 = vector.multi_reduction <add>, %26, %cst_22 [1] : vector<32x32xf32> to vector<32xf32>
    %30 = vector.shape_cast %29 : vector<32xf32> to vector<32x1xf32>
    %cst_23 = arith.constant 3.200000e+01 : f32
    %31 = vector.broadcast %cst_23 : f32 to vector<32x1xf32>
    %32 = arith.divf %30, %31 : vector<32x1xf32>
    %33 = vector.broadcast %32 : vector<32x1xf32> to vector<32x32xf32>
    %34 = arith.subf %26, %33 : vector<32x32xf32>
    %35 = vector.broadcast %32 : vector<32x1xf32> to vector<32x32xf32>
    %36 = arith.subf %26, %35 : vector<32x32xf32>
    %37 = arith.mulf %34, %36 : vector<32x32xf32>
    %cst_24 = arith.constant dense<0.000000e+00> : vector<32xf32>
    %38 = vector.multi_reduction <add>, %37, %cst_24 [1] : vector<32x32xf32> to vector<32xf32>
    %39 = vector.shape_cast %38 : vector<32xf32> to vector<32x1xf32>
    %cst_25 = arith.constant 3.200000e+01 : f32
    %40 = vector.broadcast %cst_25 : f32 to vector<32x1xf32>
    %41 = arith.divf %39, %40 : vector<32x1xf32>
    %42 = vector.broadcast %32 : vector<32x1xf32> to vector<32x32xf32>
    %43 = arith.subf %26, %42 : vector<32x32xf32>
    %cst_26 = arith.constant 9.99999974E-6 : f32
    %44 = vector.broadcast %cst_26 : f32 to vector<32x1xf32>
    %45 = arith.addf %41, %44 : vector<32x1xf32>
    %46 = math.rsqrt %45 : vector<32x1xf32>
    %47 = vector.broadcast %46 : vector<32x1xf32> to vector<32x32xf32>
    %48 = arith.mulf %43, %47 : vector<32x32xf32>
    %49 = vector.broadcast %27 : vector<1x32xf32> to vector<32x32xf32>
    %50 = arith.mulf %48, %49 : vector<32x32xf32>
    %51 = vector.broadcast %28 : vector<1x32xf32> to vector<32x32xf32>
    %52 = arith.addf %50, %51 : vector<32x32xf32>
    %53 = arith.mulf %52, %52 : vector<32x32xf32>
    %cst_27 = arith.constant dense<0.000000e+00> : vector<32xf32>
    %54 = vector.multi_reduction <add>, %53, %cst_27 [1] : vector<32x32xf32> to vector<32xf32>
    %55 = vector.shape_cast %54 : vector<32xf32> to vector<32x1xf32>
    %56 = math.sqrt %55 : vector<32x1xf32>
    %cst_28 = arith.constant 9.99999996E-13 : f32
    %57 = vector.broadcast %cst_28 : f32 to vector<32x1xf32>
    %58 = arith.maximumf %56, %57 : vector<32x1xf32>
    %59 = vector.broadcast %58 : vector<32x1xf32> to vector<32x32xf32>
    %60 = arith.divf %52, %59 : vector<32x32xf32>
    %61 = vector.extract_strided_slice %23 {offsets = [0, 32], sizes = [32, 32], strides = [1, 1]} : vector<32x64xf32> to vector<32x32xf32>
    %62 = vector.extract_strided_slice %24 {offsets = [0, 32], sizes = [1, 32], strides = [1, 1]} : vector<1x64xf32> to vector<1x32xf32>
    %63 = vector.extract_strided_slice %25 {offsets = [0, 32], sizes = [1, 32], strides = [1, 1]} : vector<1x64xf32> to vector<1x32xf32>
    %cst_29 = arith.constant dense<0.000000e+00> : vector<32xf32>
    %64 = vector.multi_reduction <add>, %61, %cst_29 [1] : vector<32x32xf32> to vector<32xf32>
    %65 = vector.shape_cast %64 : vector<32xf32> to vector<32x1xf32>
    %cst_30 = arith.constant 3.200000e+01 : f32
    %66 = vector.broadcast %cst_30 : f32 to vector<32x1xf32>
    %67 = arith.divf %65, %66 : vector<32x1xf32>
    %68 = vector.broadcast %67 : vector<32x1xf32> to vector<32x32xf32>
    %69 = arith.subf %61, %68 : vector<32x32xf32>
    %70 = vector.broadcast %67 : vector<32x1xf32> to vector<32x32xf32>
    %71 = arith.subf %61, %70 : vector<32x32xf32>
    %72 = arith.mulf %69, %71 : vector<32x32xf32>
    %cst_31 = arith.constant dense<0.000000e+00> : vector<32xf32>
    %73 = vector.multi_reduction <add>, %72, %cst_31 [1] : vector<32x32xf32> to vector<32xf32>
    %74 = vector.shape_cast %73 : vector<32xf32> to vector<32x1xf32>
    %cst_32 = arith.constant 3.200000e+01 : f32
    %75 = vector.broadcast %cst_32 : f32 to vector<32x1xf32>
    %76 = arith.divf %74, %75 : vector<32x1xf32>
    %77 = vector.broadcast %67 : vector<32x1xf32> to vector<32x32xf32>
    %78 = arith.subf %61, %77 : vector<32x32xf32>
    %cst_33 = arith.constant 9.99999974E-6 : f32
    %79 = vector.broadcast %cst_33 : f32 to vector<32x1xf32>
    %80 = arith.addf %76, %79 : vector<32x1xf32>
    %81 = math.rsqrt %80 : vector<32x1xf32>
    %82 = vector.broadcast %81 : vector<32x1xf32> to vector<32x32xf32>
    %83 = arith.mulf %78, %82 : vector<32x32xf32>
    %84 = vector.broadcast %62 : vector<1x32xf32> to vector<32x32xf32>
    %85 = arith.mulf %83, %84 : vector<32x32xf32>
    %86 = vector.broadcast %63 : vector<1x32xf32> to vector<32x32xf32>
    %87 = arith.addf %85, %86 : vector<32x32xf32>
    %88 = arith.mulf %87, %87 : vector<32x32xf32>
    %cst_34 = arith.constant dense<0.000000e+00> : vector<32xf32>
    %89 = vector.multi_reduction <add>, %88, %cst_34 [1] : vector<32x32xf32> to vector<32xf32>
    %90 = vector.shape_cast %89 : vector<32xf32> to vector<32x1xf32>
    %91 = math.sqrt %90 : vector<32x1xf32>
    %cst_35 = arith.constant 9.99999996E-13 : f32
    %92 = vector.broadcast %cst_35 : f32 to vector<32x1xf32>
    %93 = arith.maximumf %91, %92 : vector<32x1xf32>
    %94 = vector.broadcast %93 : vector<32x1xf32> to vector<32x32xf32>
    %95 = arith.divf %87, %94 : vector<32x32xf32>
    %c0_36 = arith.constant 0 : index
    %96 = memref.load %arg9[%c0_36] : memref<4xf32, #tpu.memory_space<smem>>
    %97 = arith.mulf %60, %95 : vector<32x32xf32>
    %cst_37 = arith.constant dense<0.000000e+00> : vector<32xf32>
    %98 = vector.multi_reduction <add>, %97, %cst_37 [1] : vector<32x32xf32> to vector<32xf32>
    %99 = vector.shape_cast %98 : vector<32xf32> to vector<32x1xf32>
    %100 = vector.broadcast %96 : f32 to vector<32x1xf32>
    %101 = arith.mulf %99, %100 : vector<32x1xf32>
    %c0_38 = arith.constant 0 : index
    %c0_39 = arith.constant 0 : index
    %102 = vector.load %arg7[%c0_38, %c0_39] : memref<64x64xf32, #tpu.memory_space<vmem>>, vector<32x64xf32>
    %cst_40 = arith.constant dense<0.000000e+00> : vector<32x64xf32>
    %103 = tpu.matmul %60, %102, %cst_40 {dimension_numbers = #tpu.dot_dimension_numbers<[1], [0], [0], [1], [0, 0, 1, 1], [], []>} : vector<32x32xf32>, vector<32x64xf32>, vector<32x64xf32> -> vector<32x64xf32>
    %c32 = arith.constant 32 : index
    %c0_41 = arith.constant 0 : index
    %104 = vector.load %arg7[%c32, %c0_41] : memref<64x64xf32, #tpu.memory_space<vmem>>, vector<32x64xf32>
    %cst_42 = arith.constant dense<0.000000e+00> : vector<32x64xf32>
    %105 = tpu.matmul %95, %104, %cst_42 {dimension_numbers = #tpu.dot_dimension_numbers<[1], [0], [0], [1], [0, 0, 1, 1], [], []>} : vector<32x32xf32>, vector<32x64xf32>, vector<32x64xf32> -> vector<32x64xf32>
    %106 = arith.addf %103, %105 : vector<32x64xf32>
    %c5 = arith.constant 5 : index
    %c0_43 = arith.constant 0 : index
    %107 = vector.load %arg8[%c5, %c0_43] : memref<8x128xf32, #tpu.memory_space<vmem>>, vector<1x64xf32>
    %108 = vector.broadcast %107 : vector<1x64xf32> to vector<32x64xf32>
    %109 = arith.addf %106, %108 : vector<32x64xf32>
    %cst_44 = arith.constant 0.000000e+00 : f32
    %110 = vector.broadcast %cst_44 : f32 to vector<32x64xf32>
    %111 = arith.maximumf %109, %110 : vector<32x64xf32>
    %c6 = arith.constant 6 : index
    %c0_45 = arith.constant 0 : index
    %112 = vector.load %arg8[%c6, %c0_45] : memref<8x128xf32, #tpu.memory_space<vmem>>, vector<1x64xf32>
    %113 = vector.broadcast %112 : vector<1x64xf32> to vector<32x64xf32>
    %114 = arith.mulf %111, %113 : vector<32x64xf32>
    %115 = vector.extract_strided_slice %114 {offsets = [0, 0], sizes = [32, 32], strides = [1, 1]} : vector<32x64xf32> to vector<32x32xf32>
    %cst_46 = arith.constant dense<0.000000e+00> : vector<32xf32>
    %116 = vector.multi_reduction <add>, %115, %cst_46 [1] : vector<32x32xf32> to vector<32xf32>
    %117 = vector.shape_cast %116 : vector<32xf32> to vector<32x1xf32>
    %c1_47 = arith.constant 1 : index
    %118 = memref.load %arg9[%c1_47] : memref<4xf32, #tpu.memory_space<smem>>
    %119 = vector.broadcast %118 : f32 to vector<32x1xf32>
    %120 = arith.addf %117, %119 : vector<32x1xf32>
    %121 = vector.extract_strided_slice %114 {offsets = [0, 32], sizes = [32, 32], strides = [1, 1]} : vector<32x64xf32> to vector<32x32xf32>
    %cst_48 = arith.constant dense<0.000000e+00> : vector<32xf32>
    %122 = vector.multi_reduction <add>, %121, %cst_48 [1] : vector<32x32xf32> to vector<32xf32>
    %123 = vector.shape_cast %122 : vector<32xf32> to vector<32x1xf32>
    %c2_49 = arith.constant 2 : index
    %124 = memref.load %arg9[%c2_49] : memref<4xf32, #tpu.memory_space<smem>>
    %125 = vector.broadcast %124 : f32 to vector<32x1xf32>
    %126 = arith.addf %123, %125 : vector<32x1xf32>
    %127 = arith.negf %120 : vector<32x1xf32>
    %128 = math.exp %127 : vector<32x1xf32>
    %cst_50 = arith.constant 1.000000e+00 : f32
    %129 = vector.broadcast %cst_50 : f32 to vector<32x1xf32>
    %130 = arith.addf %129, %128 : vector<32x1xf32>
    %131 = arith.divf %129, %130 : vector<32x1xf32>
    %cst_51 = arith.constant 5.000000e+00 : f32
    %132 = vector.broadcast %cst_51 : f32 to vector<32x1xf32>
    %133 = arith.mulf %131, %132 : vector<32x1xf32>
    %134 = arith.negf %126 : vector<32x1xf32>
    %135 = math.exp %134 : vector<32x1xf32>
    %cst_52 = arith.constant 1.000000e+00 : f32
    %136 = vector.broadcast %cst_52 : f32 to vector<32x1xf32>
    %137 = arith.addf %136, %135 : vector<32x1xf32>
    %138 = arith.divf %136, %137 : vector<32x1xf32>
    %139 = tpu.iota {dimensions = array<i32: 1>} : vector<32x8xi32>
    %c0_i32 = arith.constant 0 : i32
    %140 = vector.broadcast %c0_i32 : i32 to vector<32x8xi32>
    %141 = arith.cmpi eq, %139, %140 : vector<32x8xi32>
    %c1_i32 = arith.constant 1 : i32
    %142 = vector.broadcast %c1_i32 : i32 to vector<32x8xi32>
    %143 = arith.cmpi eq, %139, %142 : vector<32x8xi32>
    %c2_i32 = arith.constant 2 : i32
    %144 = vector.broadcast %c2_i32 : i32 to vector<32x8xi32>
    %145 = arith.cmpi eq, %139, %144 : vector<32x8xi32>
    %cst_53 = arith.constant 0.000000e+00 : f32
    %146 = vector.shape_cast %138 : vector<32x1xf32> to vector<32x1xf32>
    %147 = vector.broadcast %146 : vector<32x1xf32> to vector<32x8xf32>
    %148 = vector.broadcast %cst_53 : f32 to vector<32x8xf32>
    %149 = arith.select %145, %147, %148 : vector<32x8xi1>, vector<32x8xf32>
    %150 = vector.shape_cast %133 : vector<32x1xf32> to vector<32x1xf32>
    %151 = vector.broadcast %150 : vector<32x1xf32> to vector<32x8xf32>
    %152 = arith.select %143, %151, %149 : vector<32x8xi1>, vector<32x8xf32>
    %153 = vector.shape_cast %101 : vector<32x1xf32> to vector<32x1xf32>
    %154 = vector.broadcast %153 : vector<32x1xf32> to vector<32x8xf32>
    %155 = arith.select %141, %154, %152 : vector<32x8xi1>, vector<32x8xf32>
    %c0_54 = arith.constant 0 : index
    %c0_55 = arith.constant 0 : index
    %156 = vector.load %arg10[%c0_54, %c0_55] : memref<32x8xf32, #tpu.memory_space<vmem>>, vector<32x8xf32>
    tpu.vector_store %arg10[%c0_54, %c0_55], %155 {strides = array<i32>} : memref<32x8xf32, #tpu.memory_space<vmem>>, vector<32x8xf32>,
    return
  }
  func.func @transform_0(%arg0: i32) -> (i32, i32) {
    %c0_i32 = arith.constant 0 : i32
    %c0_i32_0 = arith.constant 0 : i32
    return %arg0, %c0_i32 : i32, i32
  }
  func.func @transform_1(%arg0: i32) -> (i32, i32) {
    %c0_i32 = arith.constant 0 : i32
    %c0_i32_0 = arith.constant 0 : i32
    return %arg0, %c0_i32 : i32, i32
  }
  func.func @transform_2(%arg0: i32) -> (i32, i32) {
    %c0_i32 = arith.constant 0 : i32
    %c0_i32_0 = arith.constant 0 : i32
    %c0_i32_1 = arith.constant 0 : i32
    return %c0_i32, %c0_i32_0 : i32, i32
  }
  func.func @transform_3(%arg0: i32) -> (i32, i32) {
    %c0_i32 = arith.constant 0 : i32
    %c0_i32_0 = arith.constant 0 : i32
    %c0_i32_1 = arith.constant 0 : i32
    return %c0_i32, %c0_i32_0 : i32, i32
  }
  func.func @transform_4(%arg0: i32) -> (i32, i32) {
    %c0_i32 = arith.constant 0 : i32
    %c0_i32_0 = arith.constant 0 : i32
    %c0_i32_1 = arith.constant 0 : i32
    return %c0_i32, %c0_i32_0 : i32, i32
  }
  func.func @transform_5(%arg0: i32) -> (i32, i32) {
    %c0_i32 = arith.constant 0 : i32
    %c0_i32_0 = arith.constant 0 : i32
    %c0_i32_1 = arith.constant 0 : i32
    return %c0_i32, %c0_i32_0 : i32, i32
  }
  func.func @transform_6(%arg0: i32) -> (i32, i32) {
    %c0_i32 = arith.constant 0 : i32
    %c0_i32_0 = arith.constant 0 : i32
    %c0_i32_1 = arith.constant 0 : i32
    return %c0_i32, %c0_i32_0 : i32, i32
  }
  func.func @transform_7(%arg0: i32) -> (i32, i32) {
    %c0_i32 = arith.constant 0 : i32
    %c0_i32_0 = arith.constant 0 : i32
    %c0_i32_1 = arith.constant 0 : i32
    return %c0_i32, %c0_i32_0 : i32, i32
  }
  func.func @transform_8(%arg0: i32) -> i32 {
    %c0_i32 = arith.constant 0 : i32
    %c0_i32_0 = arith.constant 0 : i32
    return %c0_i32 : i32
  }
  func.func @transform_9(%arg0: i32) -> (i32, i32) {
    %c0_i32 = arith.constant 0 : i32
    %c0_i32_0 = arith.constant 0 : i32
    return %arg0, %c0_i32 : i32, i32
  }
}

</mosaic_0001>

<bundles_post_ra>
// kernel: multitask_two_tower.1
= control target key start
LH: loop header
LB: loop body
LE: loop exit
PB: predicated region body
PF: predicated region fallthrough
CT: control target
= control target key end

     0   :  { %14 = vsyncpa [#allocation3], 0  ;;  %s1787_s30 = smov 0   ;;  %s2363_s0 = inlined_call_operand.vmem [shape: f32[64,40], index: 0, kind: input, shape index: {}]   ;;  %s2364_s1 = inlined_call_operand.vmem [shape: f32[64,24], index: 1, kind: input, shape index: {}]   ;;  %s2365_s2 = inlined_call_operand.vmem [shape: f32[40,128], index: 2, kind: input, shape index: {}]   ;;  %s2366_s3 = inlined_call_operand.vmem [shape: f32[24,128], index: 3, kind: input, shape index: {}]   ;;  %s2367_s4 = inlined_call_operand.vmem [shape: f32[128,64], index: 4, kind: input, shape index: {}]   ;;  %s2368_s5 = inlined_call_operand.vmem [shape: f32[64,64], index: 5, kind: input, shape index: {}]   ;;  %s2369_s6 = inlined_call_operand.vmem [shape: f32[64,64], index: 6, kind: input, shape index: {}]   ;;  %s2370_s7 = inlined_call_operand.vmem [shape: f32[8,128], index: 7, kind: input, shape index: {}]   ;;  %s2371_s8 = inlined_call_operand.vmem [shape: f32[4], index: 8, kind: input, shape index: {}]   ;;  %s2372_s9 = inlined_call_operand.vmem [shape: f32[64,8], index: 9, kind: output, shape index: {}]  }
   0x1 LB: > { %s1543_s10 = sadd.s32 4294967295, %s1732_s30   ;;  %p1545_p0 = scmp.ge.s32.totalorder %s1732_s30, 1  ;;  %s1732_s30 = sphi %s1787_s30, %s20_s30  }
   0x2   : > { %p250_p1 = scmp.lt.s32.totalorder %s1732_s30, 3  ;;  %s280_s13 = sshll.u32 %s2371_s8, 4  ;;  %s281_s13 = int_to_ptr.vmem [resolvable:$true] %s280_s13 }
   0x3   : > { %p1605_p3 = scmp.eq.s32.totalorder %s1543_s10, 0  ;;  %s1734_s14 = smov [#allocation2]  }
   0x4   : > { %p251_p2 = pnand %p1545_p0, %p250_p1 }
   0x6   : > { %p1601_p4 = pneg %p251_p2  ;;  %311 = sbr.rel (%p251_p2) target bundleno = 1747 (0x6d3), region = 56 }
   0x8   : > { %p1602_p5 = pnand %p1605_p3, %p1601_p4 }
   0xa   : > { %1604 = dma.vmem_to_smem (!%p1602_p5), %s281_s13, 16, %s1734_s14, [#allocation3]  }
   0xb   : > { %1727 = dma.done.wait (%p1605_p3), [#allocation3], 16  }
   0xc   : > { %1729 = vsyncadd (%p1605_p3), [#allocation3], 4294967280 }
   0xd   : > { %318 = sfence }
   0xe   : > { %v384_v0 = vld [vmem:[%s2365_s2 + $0x20] sm:$0xff]  ;;  %v383_v1 = vld [vmem:[%s2365_s2 + $0x18] sm:$0xff]  ;;  %v387_v2 = vld [vmem:[%s2366_s3 + $0x10] sm:$0xff]  ;;  %s1550_s21 = sshll.u32 %s1543_s10, 2  ;;  %vm388_vm0 = vcmask 195584   ;;  %vm430_vm1 = vcmask 326656  }
   0xf   : > { %454 = vmatpush.msra.mxu1 %v384_v0  ;;  %1588 = vmatpush.msra.mxu3 %v384_v0  ;;  %v386_v3 = vld [vmem:[%s2366_s3 + $0x8] sm:$0xff]  ;;  %p355_p6 = scmp.lt.s32.totalorder %s1550_s21, 7  ;;  %v382_v4 = vld [vmem:[%s2365_s2 + $0x10] sm:$0xff]  ;;  %v497_v5 = vld [vmem:[%s2367_s4 + $0x78] sm:$0xff]  ;;  %vm543_vm2 = vcmask 523264   ;;  %s1735_s16 = smov 96  }
  0x10   : > { %414 = vmatpush.msra.mxu0 %v387_v2  ;;  %v385_v6 = vld [vmem:[%s2366_s3] sm:$0xff]  ;;  %v496_v7 = vld [vmem:[%s2367_s4 + $0x70] sm:$0xff]  ;;  %v381_v8 = vld [vmem:[%s2365_s2 + $0x8] sm:$0xff]  ;;  %500 = vmatpush.msra.mxu2 %v497_v5  ;;  %vm587_vm3 = vcmask 261120   ;;  %s1577_s25 = sld [smem:[#allocation2 + $0x2]] }
  0x11   : > { %455 = vmatpush.msra.mxu1 %v383_v1  ;;  %1589 = vmatpush.msra.mxu3 %v383_v1  ;;  %s2382_s21 = smov (!%p355_p6, %s1550_s21), 7  ;;  %v495_v9 = vld [vmem:[%s2367_s4 + $0x68] sm:$0xff]  ;;  %v380_v10 = vld [vmem:[%s2365_s2] sm:$0xff]  ;;  %v493_v15 = vld [vmem:[%s2367_s4 + $0x58] sm:$0xff]  ;;  %s2261_s26 = sld [smem:[#allocation2]] }
  0x12   : > { %415 = vmatpush.msra.mxu0 %v386_v3  ;;  %s1825_s14 = sshll.u32 %s2382_s21, 3  ;;  %501 = vmatpush.msra.mxu2 %v496_v7  ;;  %v494_v14 = vld [vmem:[%s2367_s4 + $0x60] sm:$0xff]  ;;  %v492_v16 = vld [vmem:[%s2367_s4 + $0x50] sm:$0xff]  ;;  %v491_v18 = vld [vmem:[%s2367_s4 + $0x48] sm:$0xff] }
  0x13   : > { %456 = vmatpush.msra.mxu1 %v382_v4  ;;  %1590 = vmatpush.msra.mxu3 %v382_v4  ;;  %s1837_s22 = scalar_lea.vmem %s2364_s1, %s1825_s14  ;;  %s358_s24 = scalar_lea.vmem %s2363_s0, %s1825_s14  ;;  %v490_v20 = vld [vmem:[%s2367_s4 + $0x40] sm:$0xff]  ;;  %v489_v21 = vld [vmem:[%s2367_s4 + $0x38] sm:$0xff]  ;;  %v488_v22 = vld [vmem:[%s2367_s4 + $0x30] sm:$0xff] }
  0x14   : > { %416 = vmatpush.msra.mxu0 %v385_v6  ;;  %v376_v11 = vld [vmem:[%s1837_s22] sm:$0xff]  ;;  %v373_v13 = vld [vmem:[%s358_s24 + $0x8] sm:$0xff]  ;;  %502 = vmatpush.msra.mxu2 %v495_v9  ;;  %v374_v19 = vld [vmem:[%s358_s24 + $0x10] sm:$0xff]  ;;  %s2308_s28 = scalar_lea.vmem %s2372_s9, %s1825_s14 }
  0x15   : > { %457 = vmatpush.msra.mxu1 %v381_v8  ;;  %1591 = vmatpush.msra.mxu3 %v381_v8  ;;  %v372_v12 = vld [vmem:[%s358_s24] sm:$0xff]  ;;  %v377_v17 = vld [vmem:[%s1837_s22 + $0x8] sm:$0xff]  ;;  %v378_v23 = vld [vmem:[%s1837_s22 + $0x10] sm:$0xff] }
  0x16   : > { %1556 = vmatmul.msk.f32.vlgmr.msra.gmra.mxu0 %vm388_vm0, %v376_v11  ;;  %503 = vmatpush.msra.mxu2 %v494_v14  ;;  %v487_v24 = vld [vmem:[%s2367_s4 + $0x28] sm:$0xff]  ;;  %v375_v25 = vld [vmem:[%s358_s24 + $0x18] sm:$0xff]  ;;  %v486_v26 = vld [vmem:[%s2367_s4 + $0x20] sm:$0xff] }
  0x17   : > { %458 = vmatpush.msra.mxu1 %v380_v10  ;;  %1592 = vmatpush.msra.mxu3 %v380_v10  ;;  %v379_v27 = vld [vmem:[%s1837_s22 + $0x18] sm:$0xff]  ;;  %v484_v29 = vld [vmem:[%s2367_s4 + $0x10] sm:$0xff]  ;;  %v483_v30 = vld [vmem:[%s2367_s4 + $0x8] sm:$0xff] }
  0x18   : > { %1560 = vmatmul.msk.f32.vlgmr.msra.gmra.mxu1 %vm430_vm1, %v372_v12  ;;  %1561 = vmatmul.msk.f32.vlgmr.msra.gmra.mxu3 %vm430_vm1, %v373_v13  ;;  %v485_v28 = vld [vmem:[%s2367_s4 + $0x18] sm:$0xff]  ;;  %v482_v31 = vld [vmem:[%s2367_s4] sm:$0xff]  ;;  %v539_v35 = vld [vmem:[%s2368_s5 + $0x30] sm:$0xff] }
  0x19   : > { %504 = vmatpush.msra.mxu2 %v493_v15  ;;  %v1618_v33 = vld [vmem:[%s2370_s7] ss:$0 sm:$0xff]  ;;  %v540_v34 = vld [vmem:[%s2368_s5 + $0x38] sm:$0xff]  ;;  %v538_v38 = vld [vmem:[%s2368_s5 + $0x28] sm:$0xff] }
  0x1a   : > { %564 = vmatpush.msrb.mxu3 %v540_v34  ;;  %v537_v40 = vld [vmem:[%s2368_s5 + $0x20] sm:$0xff]  ;;  %v536_v42 = vld [vmem:[%s2368_s5 + $0x18] sm:$0xff]  ;;  %v535_v46 = vld [vmem:[%s2368_s5 + $0x10] sm:$0xff] }
  0x1b   : > { %505 = vmatpush.msra.mxu2 %v492_v16  ;;  %v534_v48 = vld [vmem:[%s2368_s5 + $0x8] sm:$0xff]  ;;  %v533_v60 = vld [vmem:[%s2368_s5] sm:$0xff] }
  0x1c   : > { %565 = vmatpush.msrb.mxu3 %v539_v35  ;;  %v1619_v61 = vld [vmem:[%s2370_s7 + $0x1] ss:$0 sm:$0xff]  ;;  %v1620_v11 = vld [vmem:[%s2370_s7 + $0x2] ss:$0 sm:$0xff] }
  0x1d   : > { %506 = vmatpush.msra.mxu2 %v491_v18 }
  0x1e   : > { %1557 = vmatmul.msk.f32.gmra.mxu0 %vm388_vm0, %v377_v17  ;;  %566 = vmatpush.msrb.mxu3 %v538_v38 }
  0x1f   : > { %507 = vmatpush.msra.mxu2 %v490_v20 }
  0x20   : > { %1562 = vmatmul.msk.f32.gmra.mxu3 %vm430_vm1, %v374_v19 }
  0x21   : > { %508 = vmatpush.msra.mxu2 %v489_v21  ;;  %567 = vmatpush.msrb.mxu3 %v537_v40 }
  0x23   : > { %509 = vmatpush.msra.mxu2 %v488_v22  ;;  %568 = vmatpush.msrb.mxu3 %v536_v42 }
  0x25   : > { %510 = vmatpush.msra.mxu2 %v487_v24  ;;  %569 = vmatpush.msrb.mxu3 %v535_v46 }
  0x26   : > { %1558 = vmatmul.msk.f32.gmra.mxu0 %vm388_vm0, %v378_v23 }
  0x27   : > { %511 = vmatpush.msra.mxu2 %v486_v26  ;;  %570 = vmatpush.msrb.mxu3 %v534_v48 }
  0x28   : > { %1563 = vmatmul.msk.f32.gmra.mxu3 %vm430_vm1, %v375_v25 }
  0x29   : > { %512 = vmatpush.msra.mxu2 %v485_v28  ;;  %571 = vmatpush.msrb.mxu3 %v533_v60 }
  0x2b   : > { %513 = vmatpush.msra.mxu2 %v484_v29 }
  0x2d   : > { %514 = vmatpush.msra.mxu2 %v483_v30 }
  0x2e   : > { %1559 = vmatmul.msk.f32.gmra.mxu0 %vm388_vm0, %v379_v27  ;;  %v1736_v27 = vmov 32.0  }
  0x2f   : > { %515 = vmatpush.msra.mxu2 %v482_v31  ;;  %1625 = vrcp.f32 %v1736_v27  ;;  %v2008_v27 = vld [vmem:[%s2370_s7 + $0x4] ss:$0 sm:$0xff] }
  0x35   : > { %v1626_v28 = vpop.eup %1625 }
  0x36   : > { %v601_v29 = vmul.f32 32.0, %v1626_v28  ;;  %vm605_vm4 = vweird.f32 %v1626_v28 }
  0x38   : > { %v602_v30 = vsub.f32 1.0, %v601_v29 }
  0x3a   : > { %v603_v31 = vmul.f32 %v1626_v28, %v602_v30 }
  0x93   : > { %v418_v32 = vpop.f32.mrf.mxu0 }
  0x95   : > { %v460_v36 = vpop.f32.mrf.mxu1 }
  0x96   : > { %v461_v37 = vadd.f32 %v460_v36, %v418_v32  ;;  %v604_v32 = vadd.f32 %v1626_v28, %v603_v31 }
  0x98   : > { %v474_v39 = vadd.f32 %v1618_v33, %v461_v37 }
  0x9a   : > { %v478_v41 = vmax.f32 %v474_v39, 0.0 }
  0x9b   : > { %v421_v43 = vpop.f32.mrf.mxu0  ;;  %v463_v44 = vpop.f32.mrf.mxu3 }
  0x9c   : > { %516 = vmatmul.f32.vlgmr.msra.gmra.mxu2 %v478_v41  ;;  %v464_v45 = vadd.f32 %v463_v44, %v421_v43 }
  0x9e   : > { %v475_v47 = vadd.f32 %v1618_v33, %v464_v45 }
  0xa0   : > { %v479_v49 = vmax.f32 %v475_v47, 0.0 }
  0xa3   : > { %v424_v50 = vpop.f32.mrf.mxu0  ;;  %v466_v51 = vpop.f32.mrf.mxu3 }
  0xa4   : > { %519 = vmatmul.f32.gmra.mxu2 %v479_v49  ;;  %v467_v52 = vadd.f32 %v466_v51, %v424_v50 }
  0xa6   : > { %v476_v53 = vadd.f32 %v1618_v33, %v467_v52 }
  0xa8   : > { %v480_v54 = vmax.f32 %v476_v53, 0.0 }
  0xab   : > { %v427_v55 = vpop.f32.mrf.mxu0  ;;  %v469_v56 = vpop.f32.mrf.mxu3 }
  0xac   : > { %522 = vmatmul.f32.gmra.mxu2 %v480_v54  ;;  %v470_v57 = vadd.f32 %v469_v56, %v427_v55 }
  0xae   : > { %v477_v58 = vadd.f32 %v1618_v33, %v470_v57  ;;  %v1947_v33 = vsel %vm605_vm4, %v1626_v28, %v604_v32 }
  0xb0   : > { %v481_v59 = vmax.f32 %v477_v58, 0.0 }
  0xb4   : > { %525 = vmatmul.f32.gmra.mxu2 %v481_v59 }
 0x11f   : > { %v517_v62 = vpop.f32.mrf.mxu2 }
 0x120   : > { %v518_v63 = vadd.f32 %v1619_v61, %v517_v62 }
 0x122   : > { %v529_v0 = vmax.f32 %v518_v63, 0.0 }
 0x124   : > { %1564 = vmatmul.msk.f32.vlgmr.msrb.gmra.mxu3 %vm543_vm2, %v529_v0 }
 0x127   : > { %v520_v1 = vpop.f32.mrf.mxu2 }
 0x128   : > { %v521_v2 = vadd.f32 %v1619_v61, %v520_v1 }
 0x12a   : > { %v530_v3 = vmax.f32 %v521_v2, 0.0 }
 0x12c   : > { %1565 = vmatmul.msk.f32.gmra.mxu3 %vm543_vm2, %v530_v3 }
 0x12f   : > { %v523_v4 = vpop.f32.mrf.mxu2 }
 0x130   : > { %v524_v5 = vadd.f32 %v1619_v61, %v523_v4 }
 0x132   : > { %v531_v6 = vmax.f32 %v524_v5, 0.0 }
 0x134   : > { %1566 = vmatmul.msk.f32.gmra.mxu3 %vm543_vm2, %v531_v6 }
 0x137   : > { %v526_v7 = vpop.f32.mrf.mxu2 }
 0x138   : > { %v527_v8 = vadd.f32 %v1619_v61, %v526_v7 }
 0x13a   : > { %v532_v9 = vmax.f32 %v527_v8, 0.0 }
 0x13c   : > { %1567 = vmatmul.msk.f32.gmra.mxu3 %vm543_vm2, %v532_v9 }
 0x1a7   : > { %v573_v10 = vpop.f32.mrf.mxu3 }
 0x1a8   : > { %v1939_v18 = vadd.f32 %v1620_v11, %v573_v10 }
 0x1aa   : > { %v588_v56 = vsel %vm587_vm3, %v1939_v18, 0.0 }
 0x1af   : > { %v576_v12 = vpop.f32.mrf.mxu3 }
 0x1b0   : > { %v1927_v13 = vadd.f32 %v1620_v11, %v576_v12 }
 0x1b2   : > { %827 = vrot.lane.b32.xlu1 %v1927_v13, %s1735_s16  ;;  %v591_v60 = vsel %vm587_vm3, %v1927_v13, 0.0 }
 0x1b7   : > { %v579_v14 = vpop.f32.mrf.mxu3 }
 0x1b8   : > { %v1931_v15 = vadd.f32 %v1620_v11, %v579_v14 }
 0x1ba   : > { %829 = vrot.lane.b32.xlu1 %v1931_v15, %s1735_s16  ;;  %v594_v59 = vsel %vm587_vm3, %v1931_v15, 0.0 }
 0x1bf   : > { %v582_v16 = vpop.f32.mrf.mxu3 }
 0x1c0   : > { %v1935_v17 = vadd.f32 %v1620_v11, %v582_v16 }
 0x1c2   : > { %831 = vrot.lane.b32.xlu0 %v1935_v17, %s1735_s16  ;;  %v597_v61 = vsel %vm587_vm3, %v1935_v17, 0.0 }
 0x1ca   : > { %825 = vrot.lane.b32.xlu0 %v1939_v18, %s1735_s16 }
 0x224   : > { %v828_v19 = vpop.permute.xlu1 %827 }
 0x225   : > { %v840_v20 = vsel %vm587_vm3, %v828_v19, 0.0 }
 0x226   : > { %841 = vadd.xlane.f32.xlu0 %v840_v20 }
 0x22c   : > { %v830_v21 = vpop.permute.xlu1 %829 }
 0x22d   : > { %v843_v22 = vsel %vm587_vm3, %v830_v21, 0.0 }
 0x22e   : > { %844 = vadd.xlane.f32.xlu1 %v843_v22 }
 0x234   : > { %v832_v23 = vpop.permute.xlu0 %831 }
 0x235   : > { %v846_v24 = vsel %vm587_vm3, %v832_v23, 0.0  ;;  %v2001_v23 = vld [vmem:[%s2370_s7 + $0x3] ss:$0 sm:$0xff] }
 0x236   : > { %847 = vadd.xlane.f32.xlu2 %v846_v24 }
 0x23c   : > { %v826_v25 = vpop.permute.xlu0 %825 }
 0x23d   : > { %v837_v26 = vsel %vm587_vm3, %v826_v25, 0.0 }
 0x23e   : > { %838 = vadd.xlane.f32.xlu2 %v837_v26 }
 0x299   : > { %v842_v40 = vpop.xlane.xlu0 %841 }
 0x29a   : > { %v850_v42 = vmul.f32 %v842_v40, %v1947_v33 }
 0x29c   : > { %v1965_v44 = vsub.f32 %v1927_v13, %v850_v42 }
 0x29e   : > { %v858_v47 = vmul.f32 %v1965_v44, %v1965_v44 }
 0x2a1   : > { %v845_v45 = vpop.xlane.xlu1 %844 }
 0x2a2   : > { %v851_v46 = vmul.f32 %v845_v45, %v1947_v33 }
 0x2a4   : > { %v1972_v48 = vsub.f32 %v1931_v15, %v851_v46 }
 0x2a6   : > { %v859_v49 = vmul.f32 %v1972_v48, %v1972_v48 }
 0x2a9   : > { %v848_v34 = vpop.xlane.xlu2 %847 }
 0x2aa   : > { %v852_v35 = vmul.f32 %v848_v34, %v1947_v33 }
 0x2ac   : > { %v1951_v36 = vsub.f32 %v1935_v17, %v852_v35 }
 0x2ae   : > { %v860_v37 = vmul.f32 %v1951_v36, %v1951_v36 }
 0x2b0   : > { %871 = vrot.lane.b32.xlu2 %v860_v37, %s1735_s16 }
 0x2b1   : > { %v839_v38 = vpop.xlane.xlu2 %838 }
 0x2b2   : > { %v849_v39 = vmul.f32 %v839_v38, %v1947_v33 }
 0x2b4   : > { %v1958_v41 = vsub.f32 %v1939_v18, %v849_v39 }
 0x2b6   : > { %v857_v43 = vmul.f32 %v1958_v41, %v1958_v41 }
 0x2b8   : > { %865 = vrot.lane.b32.xlu2 %v857_v43, %s1735_s16 }
 0x2c0   : > { %867 = vrot.lane.b32.xlu2 %v858_v47, %s1735_s16 }
 0x2c8   : > { %869 = vrot.lane.b32.xlu2 %v859_v49, %s1735_s16 }
 0x30a   : > { %v872_v50 = vpop.permute.xlu2 %871 }
 0x30b   : > { %v886_v51 = vsel %vm587_vm3, %v872_v50, 0.0 }
 0x30c   : > { %887 = vadd.xlane.f32.xlu0 %v886_v51 }
 0x312   : > { %v866_v52 = vpop.permute.xlu2 %865 }
 0x313   : > { %v877_v53 = vsel %vm587_vm3, %v866_v52, 0.0 }
 0x314   : > { %878 = vadd.xlane.f32.xlu1 %v877_v53 }
 0x31a   : > { %v868_v54 = vpop.permute.xlu2 %867 }
 0x31b   : > { %v880_v55 = vsel %vm587_vm3, %v868_v54, 0.0 }
 0x31c   : > { %881 = vadd.xlane.f32.xlu2 %v880_v55  ;;  %589 = vadd.xlane.f32.xlu1 %v588_v56 }
 0x322   : > { %v870_v57 = vpop.permute.xlu2 %869 }
 0x323   : > { %v883_v58 = vsel %vm587_vm3, %v870_v57, 0.0 }
 0x324   : > { %884 = vadd.xlane.f32.xlu0 %v883_v58  ;;  %595 = vadd.xlane.f32.xlu1 %v594_v59 }
 0x32c   : > { %592 = vadd.xlane.f32.xlu0 %v591_v60 }
 0x334   : > { %598 = vadd.xlane.f32.xlu0 %v597_v61 }
 0x37f   : > { %v888_v62 = vpop.xlane.xlu0 %887 }
 0x380   : > { %v892_v63 = vmul.f32 %v888_v62, %v1947_v33 }
 0x382   : > { %v896_v0 = vadd.f32 1e-05, %v892_v63 }
 0x384   : > { %1627 = vrsqrt.f32 %v896_v0  ;;  %vm933_vm6 = vweird.f32 %v896_v0 }
 0x387   : > { %v879_v1 = vpop.xlane.xlu1 %878 }
 0x388   : > { %v889_v2 = vmul.f32 %v879_v1, %v1947_v33 }
 0x38a   : > { %v1628_v3 = vpop.eup %1627  ;;  %v893_v4 = vadd.f32 1e-05, %v889_v2 }
 0x38b   : > { %v928_v5 = vmul.f32 %v1628_v3, %v896_v0  ;;  %vm934_vm5 = vweird.f32 %v1628_v3 }
 0x38c   : > { %1629 = vrsqrt.f32 %v893_v4  ;;  %vm935_vm7 = vmor %vm933_vm6, %vm934_vm5  ;;  %vm903_vm9 = vweird.f32 %v893_v4 }
 0x38d   : > { %v929_v6 = vmul.f32 %v1628_v3, %v928_v5 }
 0x38f   : > { %v930_v7 = vmul.f32 0.5, %v929_v6  ;;  %v882_v8 = vpop.xlane.xlu2 %881  ;;  %v590_v9 = vpop.xlane.xlu1 %589 }
 0x390   : > { %v890_v10 = vmul.f32 %v882_v8, %v1947_v33  ;;  %v607_v11 = vmul.f32 %v1947_v33, %v590_v9 }
 0x391   : > { %v931_v12 = vsub.f32 1.5, %v930_v7 }
 0x392   : > { %v1630_v14 = vpop.eup %1629  ;;  %v894_v16 = vadd.f32 1e-05, %v890_v10  ;;  %v1994_v19 = vsub.f32 %v1939_v18, %v607_v11 }
 0x393   : > { %v932_v20 = vmul.f32 %v1628_v3, %v931_v12  ;;  %v898_v21 = vmul.f32 %v1630_v14, %v893_v4  ;;  %vm904_vm8 = vweird.f32 %v1630_v14 }
 0x394   : > { %1631 = vrsqrt.f32 %v894_v16  ;;  %v615_v22 = vmul.f32 %v1994_v19, %v1994_v19  ;;  %vm905_vm10 = vmor %vm903_vm9, %vm904_vm8  ;;  %vm913_vm12 = vweird.f32 %v894_v16 }
 0x395   : > { %v936_v24 = vsel %vm935_vm7, %v1628_v3, %v932_v20  ;;  %v899_v25 = vmul.f32 %v1630_v14, %v898_v21 }
 0x396   : > { %v940_v26 = vmul.f32 %v936_v24, %v1951_v36  ;;  %v619_v18 = vsel %vm587_vm3, %v615_v22, 0.0 }
 0x397   : > { %v900_v28 = vmul.f32 0.5, %v899_v25  ;;  %v885_v29 = vpop.xlane.xlu0 %884  ;;  %620 = vadd.xlane.f32.xlu2 %v619_v18  ;;  %v596_v5 = vpop.xlane.xlu1 %595 }
 0x398   : > { %v891_v30 = vmul.f32 %v885_v29, %v1947_v33  ;;  %v944_v31 = vmul.f32 %v2001_v23, %v940_v26 }
 0x399   : > { %v901_v32 = vsub.f32 1.5, %v900_v28 }
 0x39a   : > { %v1632_v34 = vpop.eup %1631  ;;  %v895_v35 = vadd.f32 1e-05, %v891_v30  ;;  %v2013_v36 = vadd.f32 %v2008_v27, %v944_v31 }
 0x39b   : > { %v902_v37 = vmul.f32 %v1630_v14, %v901_v32  ;;  %v908_v38 = vmul.f32 %v1632_v34, %v894_v16  ;;  %vm914_vm11 = vweird.f32 %v1632_v34 }
 0x39c   : > { %1633 = vrsqrt.f32 %v895_v35  ;;  %v952_v39 = vmul.f32 %v2013_v36, %v2013_v36  ;;  %vm915_vm13 = vmor %vm913_vm12, %vm914_vm11  ;;  %vm923_vm15 = vweird.f32 %v895_v35 }
 0x39d   : > { %v906_v40 = vsel %vm905_vm10, %v1630_v14, %v902_v37  ;;  %v909_v42 = vmul.f32 %v1632_v34, %v908_v38 }
 0x39e   : > { %v937_v43 = vmul.f32 %v906_v40, %v1958_v41  ;;  %963 = vrot.lane.b32.xlu1 %v952_v39, %s1735_s16 }
 0x39f   : > { %v910_v45 = vmul.f32 0.5, %v909_v42  ;;  %v593_v2 = vpop.xlane.xlu0 %592 }
 0x3a0   : > { %v941_v46 = vmul.f32 %v2001_v23, %v937_v43  ;;  %v608_v3 = vmul.f32 %v1947_v33, %v593_v2 }
 0x3a1   : > { %v911_v47 = vsub.f32 1.5, %v910_v45 }
 0x3a2   : > { %v1634_v49 = vpop.eup %1633  ;;  %v2021_v50 = vadd.f32 %v2008_v27, %v941_v46  ;;  %v2044_v4 = vsub.f32 %v1927_v13, %v608_v3 }
 0x3a3   : > { %v912_v51 = vmul.f32 %v1632_v34, %v911_v47  ;;  %v918_v52 = vmul.f32 %v1634_v49, %v895_v35  ;;  %vm924_vm14 = vweird.f32 %v1634_v49 }
 0x3a4   : > { %v949_v53 = vmul.f32 %v2021_v50, %v2021_v50  ;;  %vm925_vm0 = vmor %vm923_vm15, %vm924_vm14  ;;  %v616_v6 = vmul.f32 %v2044_v4, %v2044_v4 }
 0x3a5   : > { %v916_v54 = vsel %vm915_vm13, %v1632_v34, %v912_v51  ;;  %v919_v41 = vmul.f32 %v1634_v49, %v918_v52 }
 0x3a6   : > { %v938_v55 = vmul.f32 %v916_v54, %v1965_v44  ;;  %957 = vrot.lane.b32.xlu0 %v949_v53, %s1735_s16  ;;  %v622_v9 = vsel %vm587_vm3, %v616_v6, 0.0 }
 0x3a7   : > { %v920_v56 = vmul.f32 0.5, %v919_v41  ;;  %v599_v8 = vpop.xlane.xlu0 %598 }
 0x3a8   : > { %v942_v57 = vmul.f32 %v2001_v23, %v938_v55  ;;  %v610_v10 = vmul.f32 %v1947_v33, %v599_v8 }
 0x3a9   : > { %v921_v58 = vsub.f32 1.5, %v920_v56 }
 0x3aa   : > { %v2029_v59 = vadd.f32 %v2008_v27, %v942_v57  ;;  %v2057_v13 = vsub.f32 %v1935_v17, %v610_v10 }
 0x3ab   : > { %v922_v60 = vmul.f32 %v1634_v49, %v921_v58 }
 0x3ac   : > { %v950_v61 = vmul.f32 %v2029_v59, %v2029_v59  ;;  %v618_v14 = vmul.f32 %v2057_v13, %v2057_v13 }
 0x3ad   : > { %v926_v62 = vsel %vm925_vm0, %v1634_v49, %v922_v60 }
 0x3ae   : > { %v939_v63 = vmul.f32 %v926_v62, %v1972_v48  ;;  %959 = vrot.lane.b32.xlu1 %v950_v61, %s1735_s16  ;;  %v609_v48 = vmul.f32 %v1947_v33, %v596_v5 }
 0x3b0   : > { %v943_v44 = vmul.f32 %v2001_v23, %v939_v63  ;;  %v2050_v7 = vsub.f32 %v1931_v15, %v609_v48  ;;  %v628_v15 = vsel %vm587_vm3, %v618_v14, 0.0 }
 0x3b2   : > { %v2037_v0 = vadd.f32 %v2008_v27, %v943_v44  ;;  %v617_v11 = vmul.f32 %v2050_v7, %v2050_v7 }
 0x3b4   : > { %v951_v1 = vmul.f32 %v2037_v0, %v2037_v0  ;;  %v625_v12 = vsel %vm587_vm3, %v617_v11, 0.0 }
 0x3b6   : > { %961 = vrot.lane.b32.xlu2 %v951_v1, %s1735_s16 }
 0x3d0   : > { %623 = vadd.xlane.f32.xlu0 %v622_v9 }
 0x3d8   : > { %626 = vadd.xlane.f32.xlu1 %v625_v12 }
 0x3df   : > { %629 = vadd.xlane.f32.xlu2 %v628_v15 }
 0x40a   : > { %v621_v16 = vpop.xlane.xlu2 %620 }
 0x40b   : > { %v631_v20 = vmul.f32 %v621_v16, %v1947_v33 }
 0x40d   : > { %v635_v21 = vadd.f32 1e-05, %v631_v20 }
 0x40f   : > { %1635 = vrsqrt.f32 %v635_v21  ;;  %vm645_vm2 = vweird.f32 %v635_v21 }
 0x410   : > { %v964_v22 = vpop.permute.xlu1 %963 }
 0x411   : > { %v978_v24 = vsel %vm587_vm3, %v964_v22, 0.0 }
 0x412   : > { %979 = vadd.xlane.f32.xlu0 %v978_v24  ;;  %v962_v32 = vpop.permute.xlu2 %961 }
 0x413   : > { %v975_v37 = vsel %vm587_vm3, %v962_v32, 0.0 }
 0x415   : > { %v1636_v17 = vpop.eup %1635 }
 0x416   : > { %v640_v25 = vmul.f32 %v1636_v17, %v635_v21  ;;  %vm646_vm1 = vweird.f32 %v1636_v17 }
 0x417   : > { %vm647_vm4 = vmor %vm645_vm2, %vm646_vm1 }
 0x418   : > { %v641_v26 = vmul.f32 %v1636_v17, %v640_v25  ;;  %v958_v18 = vpop.permute.xlu0 %957 }
 0x419   : > { %v969_v28 = vsel %vm587_vm3, %v958_v18, 0.0 }
 0x41a   : > { %v642_v29 = vmul.f32 0.5, %v641_v26  ;;  %970 = vadd.xlane.f32.xlu1 %v969_v28 }
 0x41c   : > { %v643_v30 = vsub.f32 1.5, %v642_v29 }
 0x41e   : > { %v644_v31 = vmul.f32 %v1636_v17, %v643_v30 }
 0x420   : > { %v648_v34 = vsel %vm647_vm4, %v1636_v17, %v644_v31  ;;  %v960_v35 = vpop.permute.xlu1 %959 }
 0x421   : > { %v972_v38 = vsel %vm587_vm3, %v960_v35, 0.0  ;;  %v679_v39 = vmul.f32 %v648_v34, %v1994_v19 }
 0x422   : > { %976 = vadd.xlane.f32.xlu1 %v975_v37  ;;  %973 = vadd.xlane.f32.xlu0 %v972_v38 }
 0x423   : > { %v684_v40 = vmul.f32 %v2001_v23, %v679_v39 }
 0x425   : > { %v2071_v42 = vadd.f32 %v2008_v27, %v684_v40 }
 0x427   : > { %v693_v43 = vmul.f32 %v2071_v42, %v2071_v42 }
 0x429   : > { %v697_v45 = vsel %vm587_vm3, %v693_v43, 0.0 }
 0x42a   : > { %698 = vadd.xlane.f32.xlu0 %v697_v45 }
 0x443   : > { %v624_v46 = vpop.xlane.xlu0 %623 }
 0x444   : > { %v632_v47 = vmul.f32 %v624_v46, %v1947_v33 }
 0x446   : > { %v636_v49 = vadd.f32 1e-05, %v632_v47 }
 0x448   : > { %1637 = vrsqrt.f32 %v636_v49  ;;  %vm655_vm6 = vweird.f32 %v636_v49 }
 0x44b   : > { %v627_v51 = vpop.xlane.xlu1 %626 }
 0x44c   : > { %v633_v19 = vmul.f32 %v627_v51, %v1947_v33 }
 0x44e   : > { %v1638_v52 = vpop.eup %1637  ;;  %v637_v53 = vadd.f32 1e-05, %v633_v19 }
 0x44f   : > { %v650_v54 = vmul.f32 %v1638_v52, %v636_v49  ;;  %vm656_vm5 = vweird.f32 %v1638_v52 }
 0x450   : > { %1639 = vrsqrt.f32 %v637_v53  ;;  %vm657_vm7 = vmor %vm655_vm6, %vm656_vm5  ;;  %vm665_vm9 = vweird.f32 %v637_v53 }
 0x451   : > { %v651_v41 = vmul.f32 %v1638_v52, %v650_v54 }
 0x452   : > { %v630_v55 = vpop.xlane.xlu2 %629 }
 0x453   : > { %v652_v56 = vmul.f32 0.5, %v651_v41  ;;  %v634_v57 = vmul.f32 %v630_v55, %v1947_v33 }
 0x455   : > { %v653_v58 = vsub.f32 1.5, %v652_v56  ;;  %v638_v60 = vadd.f32 1e-05, %v634_v57 }
 0x456   : > { %v1640_v61 = vpop.eup %1639 }
 0x457   : > { %v654_v62 = vmul.f32 %v1638_v52, %v653_v58  ;;  %v660_v63 = vmul.f32 %v1640_v61, %v637_v53  ;;  %1641 = vrsqrt.f32 %v638_v60  ;;  %vm666_vm8 = vweird.f32 %v1640_v61 }
 0x458   : > { %vm667_vm10 = vmor %vm665_vm9, %vm666_vm8  ;;  %vm675_vm12 = vweird.f32 %v638_v60 }
 0x459   : > { %v658_v44 = vsel %vm657_vm7, %v1638_v52, %v654_v62  ;;  %v661_v1 = vmul.f32 %v1640_v61, %v660_v63 }
 0x45a   : > { %v680_v2 = vmul.f32 %v658_v44, %v2044_v4 }
 0x45b   : > { %v662_v3 = vmul.f32 0.5, %v661_v1 }
 0x45c   : > { %v685_v5 = vmul.f32 %v2001_v23, %v680_v2 }
 0x45d   : > { %v1642_v48 = vpop.eup %1641  ;;  %v663_v6 = vsub.f32 1.5, %v662_v3 }
 0x45e   : > { %v670_v33 = vmul.f32 %v1642_v48, %v638_v60  ;;  %v2082_v8 = vadd.f32 %v2008_v27, %v685_v5  ;;  %vm676_vm11 = vweird.f32 %v1642_v48 }
 0x45f   : > { %v664_v9 = vmul.f32 %v1640_v61, %v663_v6  ;;  %vm677_vm13 = vmor %vm675_vm12, %vm676_vm11 }
 0x460   : > { %v671_v10 = vmul.f32 %v1642_v48, %v670_v33  ;;  %v694_v11 = vmul.f32 %v2082_v8, %v2082_v8 }
 0x461   : > { %v668_v12 = vsel %vm667_vm10, %v1640_v61, %v664_v9 }
 0x462   : > { %v672_v14 = vmul.f32 0.5, %v671_v10  ;;  %v700_v4 = vsel %vm587_vm3, %v694_v11, 0.0  ;;  %v681_v15 = vmul.f32 %v668_v12, %v2050_v7 }
 0x463   : > { %701 = vadd.xlane.f32.xlu1 %v700_v4 }
 0x464   : > { %v673_v16 = vsub.f32 1.5, %v672_v14  ;;  %v686_v20 = vmul.f32 %v2001_v23, %v681_v15 }
 0x466   : > { %v674_v21 = vmul.f32 %v1642_v48, %v673_v16  ;;  %v2090_v22 = vadd.f32 %v2008_v27, %v686_v20 }
 0x468   : > { %v678_v24 = vsel %vm677_vm13, %v1642_v48, %v674_v21  ;;  %v695_v17 = vmul.f32 %v2090_v22, %v2090_v22 }
 0x469   : > { %v682_v25 = vmul.f32 %v678_v24, %v2057_v13 }
 0x46a   : > { %v703_v26 = vsel %vm587_vm3, %v695_v17, 0.0 }
 0x46b   : > { %704 = vadd.xlane.f32.xlu0 %v703_v26  ;;  %v687_v7 = vmul.f32 %v2001_v23, %v682_v25 }
 0x46d   : > { %v2098_v18 = vadd.f32 %v2008_v27, %v687_v7 }
 0x46f   : > { %v696_v28 = vmul.f32 %v2098_v18, %v2098_v18 }
 0x471   : > { %v706_v29 = vsel %vm587_vm3, %v696_v28, 0.0 }
 0x472   : > { %707 = vadd.xlane.f32.xlu2 %v706_v29 }
 0x485   : > { %v980_v30 = vpop.xlane.xlu0 %979 }
 0x486   : > { %1643 = vrsqrt.f32 %v980_v30  ;;  %vm1024_vm14 = vcmp.eq.f32.partialorder %v980_v30, inf  ;;  %v1027_v46 = vand.u32 2147483648, %v980_v30  ;;  %vm1026_vm15 = vcmp.eq.f32.partialorder %v980_v30, 0.0 }
 0x48c   : > { %v1644_v31 = vpop.eup %1643 }
 0x48d   : > { %v1018_v32 = vmul.f32 %v1644_v31, %v980_v30  ;;  %v971_v34 = vpop.xlane.xlu1 %970 }
 0x48e   : > { %1645 = vrsqrt.f32 %v971_v34  ;;  %vm988_vm0 = vcmp.eq.f32.partialorder %v971_v34, inf  ;;  %v991_v60 = vand.u32 2147483648, %v971_v34  ;;  %vm990_vm1 = vcmp.eq.f32.partialorder %v971_v34, 0.0 }
 0x48f   : > { %v1019_v13 = vmul.f32 %v1644_v31, %v1018_v32 }
 0x491   : > { %v1020_v35 = vmul.f32 0.5, %v1019_v13 }
 0x493   : > { %v1021_v37 = vsub.f32 1.5, %v1020_v35 }
 0x494   : > { %v1646_v38 = vpop.eup %1645 }
 0x495   : > { %v1022_v23 = vmul.f32 %v1644_v31, %v1021_v37  ;;  %v982_v39 = vmul.f32 %v1646_v38, %v971_v34  ;;  %v974_v27 = vpop.xlane.xlu0 %973  ;;  %v977_v40 = vpop.xlane.xlu1 %976 }
 0x496   : > { %1647 = vrsqrt.f32 %v974_v27  ;;  %vm1000_vm2 = vcmp.eq.f32.partialorder %v974_v27, inf  ;;  %vm1002_vm4 = vcmp.eq.f32.partialorder %v974_v27, 0.0  ;;  %v1003_v12 = vand.u32 2147483648, %v974_v27 }
 0x497   : > { %v1023_v43 = vmul.f32 %v1022_v23, %v980_v30  ;;  %v983_v45 = vmul.f32 %v1646_v38, %v982_v39  ;;  %1649 = vrsqrt.f32 %v977_v40  ;;  %vm1012_vm6 = vcmp.eq.f32.partialorder %v977_v40, inf }
 0x498   : > { %vm1014_vm7 = vcmp.eq.f32.partialorder %v977_v40, 0.0  ;;  %v1015_v21 = vand.u32 2147483648, %v977_v40 }
 0x499   : > { %v1025_v47 = vsel %vm1024_vm14, %v980_v30, %v1023_v43  ;;  %v984_v49 = vmul.f32 0.5, %v983_v45 }
 0x49a   : > { %v1028_v51 = vsel %vm1026_vm15, %v1027_v46, %v1025_v47 }
 0x49b   : > { %v1032_v19 = vmax.f32 %v1028_v51, 1e-12  ;;  %v985_v52 = vsub.f32 1.5, %v984_v49 }
 0x49c   : > { %v1648_v53 = vpop.eup %1647 }
 0x49d   : > { %v1650_v54 = vpop.eup %1649  ;;  %1651 = vrcp.f32 %v1032_v19  ;;  %v986_v41 = vmul.f32 %v1646_v38, %v985_v52  ;;  %v994_v55 = vmul.f32 %v1648_v53, %v974_v27  ;;  %v1089_v14 = vand.u32 2147483648, %v1032_v19 }
 0x49e   : > { %v1006_v56 = vmul.f32 %v1650_v54, %v977_v40  ;;  %v1087_v16 = vand.u32 2147483647, %v1032_v19  ;;  %vm1083_vm8 = vweird.f32 %v1032_v19 }
 0x49f   : > { %v987_v57 = vmul.f32 %v986_v41, %v971_v34  ;;  %v995_v58 = vmul.f32 %v1648_v53, %v994_v55  ;;  %v1090_v29 = vor.u32 1.1754944e-38, %v1089_v14 }
 0x4a0   : > { %v1007_v61 = vmul.f32 %v1650_v54, %v1006_v56  ;;  %vm1088_vm10 = vcmp.eq.f32.partialorder %v1087_v16, 8.507059e+37 }
 0x4a1   : > { %v989_v62 = vsel %vm988_vm0, %v971_v34, %v987_v57  ;;  %v996_v63 = vmul.f32 0.5, %v995_v58 }
 0x4a2   : > { %v992_v44 = vsel %vm990_vm1, %v991_v60, %v989_v62  ;;  %v1008_v1 = vmul.f32 0.5, %v1007_v61 }
 0x4a3   : > { %v1652_v2 = vpop.eup %1651  ;;  %v1029_v3 = vmax.f32 %v992_v44, 1e-12  ;;  %v997_v5 = vsub.f32 1.5, %v996_v63 }
 0x4a4   : > { %v1009_v48 = vsub.f32 1.5, %v1008_v1  ;;  %v1079_v6 = vmul.f32 %v1652_v2, %v1032_v19  ;;  %vm1084_vm5 = vweird.f32 %v1652_v2 }
 0x4a5   : > { %1653 = vrcp.f32 %v1029_v3  ;;  %v998_v33 = vmul.f32 %v1648_v53, %v997_v5  ;;  %vm1085_vm9 = vmor %vm1083_vm8, %vm1084_vm5  ;;  %v1044_v37 = vand.u32 2147483648, %v1029_v3  ;;  %v1042_v23 = vand.u32 2147483647, %v1029_v3  ;;  %v1138_v5 = vld [vmem:[%s2369_s6 + $0x38] sm:$0xff] }
 0x4a6   : > { %v1010_v9 = vmul.f32 %v1650_v54, %v1009_v48  ;;  %v1080_v10 = vsub.f32 1.0, %v1079_v6  ;;  %vm1038_vm12 = vweird.f32 %v1029_v3  ;;  %v1137_v48 = vld [vmem:[%s2369_s6 + $0x30] sm:$0xff]  ;;  %1159 = vmatpush.msrb.mxu0 %v1138_v5  ;;  %1593 = vmatpush.msrb.mxu1 %v1138_v5 }
 0x4a7   : > { %v999_v11 = vmul.f32 %v998_v33, %v974_v27  ;;  %vm1043_vm14 = vcmp.eq.f32.partialorder %v1042_v23, 8.507059e+37  ;;  %v1133_v23 = vld [vmem:[%s2369_s6 + $0x10] sm:$0xff] }
 0x4a8   : > { %v1011_v4 = vmul.f32 %v1010_v9, %v977_v40  ;;  %v1081_v15 = vmul.f32 %v1652_v2, %v1080_v10  ;;  %1160 = vmatpush.msrb.mxu0 %v1137_v48  ;;  %1594 = vmatpush.msrb.mxu1 %v1137_v48 }
 0x4a9   : > { %v1001_v20 = vsel %vm1000_vm2, %v974_v27, %v999_v11 }
 0x4aa   : > { %v1004_v24 = vsel %vm1002_vm4, %v1003_v12, %v1001_v20  ;;  %v1013_v17 = vsel %vm1012_vm6, %v977_v40, %v1011_v4  ;;  %v1082_v25 = vadd.f32 %v1652_v2, %v1081_v15  ;;  %v1045_v40 = vor.u32 1.1754944e-38, %v1044_v37 }
 0x4ab   : > { %v1654_v26 = vpop.eup %1653  ;;  %v1030_v7 = vmax.f32 %v1004_v24, 1e-12  ;;  %v1016_v28 = vsel %vm1014_vm7, %v1015_v21, %v1013_v17 }
 0x4ac   : > { %v1031_v30 = vmax.f32 %v1016_v28, 1e-12  ;;  %v1086_v31 = vsel %vm1085_vm9, %v1652_v2, %v1082_v25  ;;  %v1034_v32 = vmul.f32 %v1654_v26, %v1029_v3  ;;  %vm1039_vm11 = vweird.f32 %v1654_v26  ;;  %v699_v3 = vpop.xlane.xlu0 %698  ;;  %v1136_v25 = vld [vmem:[%s2369_s6 + $0x28] sm:$0xff] }
 0x4ad   : > { %1655 = vrcp.f32 %v1030_v7  ;;  %v1091_v34 = vsel %vm1088_vm10, %v1090_v29, %v1086_v31  ;;  %vm1040_vm13 = vmor %vm1038_vm12, %vm1039_vm11  ;;  %v1059_v19 = vand.u32 2147483648, %v1030_v7  ;;  %v1057_v54 = vand.u32 2147483647, %v1030_v7  ;;  %1595 = vmatpush.msrb.mxu1 %v1136_v25  ;;  %1161 = vmatpush.msrb.mxu0 %v1136_v25 }
 0x4ae   : > { %1657 = vrcp.f32 %v1031_v30  ;;  %v1092_v13 = vmul.f32 %v1091_v34, %v2013_v36  ;;  %v1035_v35 = vsub.f32 1.0, %v1034_v32  ;;  %v1074_v41 = vand.u32 2147483648, %v1031_v30 }
 0x4af   : > { %v1072_v56 = vand.u32 2147483647, %v1031_v30  ;;  %vm1053_vm1 = vweird.f32 %v1030_v7  ;;  %v1060_v58 = vor.u32 1.1754944e-38, %v1059_v19  ;;  %vm1068_vm4 = vweird.f32 %v1031_v30 }
 0x4b0   : > { %1104 = vrot.lane.b32.xlu1 %v1092_v13, %s1735_s16  ;;  %v1036_v38 = vmul.f32 %v1654_v26, %v1035_v35  ;;  %vm1058_vm5 = vcmp.eq.f32.partialorder %v1057_v54, 8.507059e+37  ;;  %1659 = vrsqrt.f32 %v699_v3  ;;  %vm716_vm8 = vcmp.eq.f32.partialorder %v699_v3, inf }
 0x4b1   : > { %vm1073_vm7 = vcmp.eq.f32.partialorder %v1072_v56, 8.507059e+37  ;;  %v719_v13 = vand.u32 2147483648, %v699_v3  ;;  %vm718_vm9 = vcmp.eq.f32.partialorder %v699_v3, 0.0 }
 0x4b2   : > { %v1037_v39 = vadd.f32 %v1654_v26, %v1036_v38  ;;  %v1134_v38 = vld [vmem:[%s2369_s6 + $0x18] sm:$0xff] }
 0x4b3   : > { %v1656_v27 = vpop.eup %1655 }
 0x4b4   : > { %v1658_v43 = vpop.eup %1657  ;;  %v1041_v45 = vsel %vm1040_vm13, %v1654_v26, %v1037_v39  ;;  %v1049_v46 = vmul.f32 %v1656_v27, %v1030_v7  ;;  %vm1054_vm15 = vweird.f32 %v1656_v27  ;;  %v1135_v26 = vld [vmem:[%s2369_s6 + $0x20] sm:$0xff] }
 0x4b5   : > { %v1046_v47 = vsel %vm1043_vm14, %v1045_v40, %v1041_v45  ;;  %v1064_v49 = vmul.f32 %v1658_v43, %v1031_v30  ;;  %vm1069_vm0 = vweird.f32 %v1658_v43  ;;  %vm1055_vm2 = vmor %vm1053_vm1, %vm1054_vm15  ;;  %1596 = vmatpush.msrb.mxu1 %v1135_v26  ;;  %1162 = vmatpush.msrb.mxu0 %v1135_v26  ;;  %v1132_v40 = vld [vmem:[%s2369_s6 + $0x8] sm:$0xff] }
 0x4b6   : > { %v1047_v36 = vmul.f32 %v1046_v47, %v2021_v50  ;;  %v1050_v51 = vsub.f32 1.0, %v1049_v46  ;;  %vm1070_vm6 = vmor %vm1068_vm4, %vm1069_vm0  ;;  %v1075_v50 = vor.u32 1.1754944e-38, %v1074_v41  ;;  %v1131_v46 = vld [vmem:[%s2369_s6] sm:$0xff] }
 0x4b7   : > { %v1065_v52 = vsub.f32 1.0, %v1064_v49  ;;  %1200 = vmatpush.msra.mxu1 %v1134_v38 }
 0x4b8   : > { %1098 = vrot.lane.b32.xlu0 %v1047_v36, %s1735_s16  ;;  %v1051_v53 = vmul.f32 %v1656_v27, %v1050_v51 }
 0x4b9   : > { %v1066_v55 = vmul.f32 %v1658_v43, %v1065_v52  ;;  %1201 = vmatpush.msra.mxu1 %v1133_v23 }
 0x4ba   : > { %v1052_v57 = vadd.f32 %v1656_v27, %v1051_v53 }
 0x4bb   : > { %v1067_v60 = vadd.f32 %v1658_v43, %v1066_v55  ;;  %1202 = vmatpush.msra.mxu1 %v1132_v40 }
 0x4bc   : > { %v1056_v61 = vsel %vm1055_vm2, %v1656_v27, %v1052_v57 }
 0x4bd   : > { %v1061_v62 = vsel %vm1058_vm5, %v1060_v58, %v1056_v61  ;;  %v1071_v63 = vsel %vm1070_vm6, %v1658_v43, %v1067_v60  ;;  %1203 = vmatpush.msra.mxu1 %v1131_v46 }
 0x4be   : > { %v1062_v44 = vmul.f32 %v1061_v62, %v2029_v59  ;;  %v1076_v1 = vsel %vm1073_vm7, %v1075_v50, %v1071_v63 }
 0x4bf   : > { %v1077_v2 = vmul.f32 %v1076_v1, %v2037_v0  ;;  %v1660_v0 = vpop.eup %1659 }
 0x4c0   : > { %1100 = vrot.lane.b32.xlu2 %v1062_v44, %s1735_s16  ;;  %v710_v6 = vmul.f32 %v1660_v0, %v699_v3 }
 0x4c1   : > { %1102 = vrot.lane.b32.xlu0 %v1077_v2, %s1735_s16 }
 0x4c2   : > { %v711_v9 = vmul.f32 %v1660_v0, %v710_v6 }
 0x4c4   : > { %v712_v12 = vmul.f32 0.5, %v711_v9 }
 0x4c6   : > { %v713_v4 = vsub.f32 1.5, %v712_v12 }
 0x4c8   : > { %v714_v21 = vmul.f32 %v1660_v0, %v713_v4 }
 0x4ca   : > { %v715_v7 = vmul.f32 %v714_v21, %v699_v3 }
 0x4cc   : > { %v717_v31 = vsel %vm716_vm8, %v699_v3, %v715_v7 }
 0x4cd   : > { %v720_v35 = vsel %vm718_vm9, %v719_v13, %v717_v31 }
 0x4ce   : > { %v757_v43 = vmax.f32 %v720_v35, 1e-12 }
 0x4d0   : > { %v772_v6 = vand.u32 2147483648, %v757_v43  ;;  %vm766_vm1 = vweird.f32 %v757_v43 }
 0x4d6   : > { %v702_v59 = vpop.xlane.xlu1 %701 }
 0x4d7   : > { %1661 = vrsqrt.f32 %v702_v59  ;;  %vm728_vm10 = vcmp.eq.f32.partialorder %v702_v59, inf  ;;  %v731_v47 = vand.u32 2147483648, %v702_v59  ;;  %vm730_vm11 = vcmp.eq.f32.partialorder %v702_v59, 0.0 }
 0x4dd   : > { %v1662_v33 = vpop.eup %1661 }
 0x4de   : > { %v705_v10 = vpop.xlane.xlu0 %704  ;;  %v722_v11 = vmul.f32 %v1662_v33, %v702_v59 }
 0x4df   : > { %1663 = vrsqrt.f32 %v705_v10  ;;  %vm740_vm12 = vcmp.eq.f32.partialorder %v705_v10, inf  ;;  %v743_v56 = vand.u32 2147483648, %v705_v10  ;;  %vm742_vm13 = vcmp.eq.f32.partialorder %v705_v10, 0.0 }
 0x4e0   : > { %v723_v14 = vmul.f32 %v1662_v33, %v722_v11 }
 0x4e2   : > { %v724_v20 = vmul.f32 0.5, %v723_v14  ;;  %v773_v14 = vor.u32 1.1754944e-38, %v772_v6 }
 0x4e4   : > { %v725_v17 = vsub.f32 1.5, %v724_v20 }
 0x4e5   : > { %v2117_v15 = vpop.xlane.xlu2 %707  ;;  %v1664_v16 = vpop.eup %1663 }
 0x4e6   : > { %1665 = vrsqrt.f32 %v2117_v15  ;;  %v734_v24 = vmul.f32 %v1664_v16, %v705_v10  ;;  %v726_v30 = vmul.f32 %v1662_v33, %v725_v17  ;;  %vm752_vm14 = vcmp.eq.f32.partialorder %v2117_v15, inf }
 0x4e7   : > { %1667 = vrcp.f32 %v757_v43  ;;  %v755_v44 = vand.u32 2147483648, %v2117_v15  ;;  %vm754_vm15 = vcmp.eq.f32.partialorder %v2117_v15, 0.0  ;;  %v770_v33 = vand.u32 2147483647, %v757_v43 }
 0x4e8   : > { %v735_v28 = vmul.f32 %v1664_v16, %v734_v24  ;;  %v727_v37 = vmul.f32 %v726_v30, %v702_v59 }
 0x4e9   : > { %vm771_vm4 = vcmp.eq.f32.partialorder %v770_v33, 8.507059e+37 }
 0x4ea   : > { %v736_v32 = vmul.f32 0.5, %v735_v28  ;;  %v729_v45 = vsel %vm728_vm10, %v702_v59, %v727_v37 }
 0x4eb   : > { %v732_v51 = vsel %vm730_vm11, %v731_v47, %v729_v45 }
 0x4ec   : > { %v1666_v29 = vpop.eup %1665  ;;  %v737_v39 = vsub.f32 1.5, %v736_v32  ;;  %v758_v53 = vmax.f32 %v732_v51, 1e-12 }
 0x4ed   : > { %v746_v34 = vmul.f32 %v1666_v29, %v2117_v15  ;;  %v1668_v54 = vpop.eup %1667 }
 0x4ee   : > { %v738_v49 = vmul.f32 %v1664_v16, %v737_v39  ;;  %1669 = vrcp.f32 %v758_v53  ;;  %v762_v58 = vmul.f32 %v1668_v54, %v757_v43  ;;  %vm767_vm0 = vweird.f32 %v1668_v54 }
 0x4ef   : > { %v747_v27 = vmul.f32 %v1666_v29, %v746_v34  ;;  %vm768_vm2 = vmor %vm766_vm1, %vm767_vm0  ;;  %vm781_vm6 = vweird.f32 %v758_v53  ;;  %v787_v21 = vand.u32 2147483648, %v758_v53  ;;  %v785_v24 = vand.u32 2147483647, %v758_v53 }
 0x4f0   : > { %v739_v19 = vmul.f32 %v738_v49, %v705_v10  ;;  %v763_v62 = vsub.f32 1.0, %v762_v58 }
 0x4f1   : > { %v748_v36 = vmul.f32 0.5, %v747_v27  ;;  %v788_v30 = vor.u32 1.1754944e-38, %v787_v21  ;;  %vm786_vm8 = vcmp.eq.f32.partialorder %v785_v24, 8.507059e+37 }
 0x4f2   : > { %v741_v41 = vsel %vm740_vm12, %v705_v10, %v739_v19  ;;  %v764_v3 = vmul.f32 %v1668_v54, %v763_v62 }
 0x4f3   : > { %v749_v52 = vsub.f32 1.5, %v748_v36  ;;  %v744_v57 = vsel %vm742_vm13, %v743_v56, %v741_v41 }
 0x4f4   : > { %v759_v61 = vmax.f32 %v744_v57, 1e-12  ;;  %v1670_v50 = vpop.eup %1669  ;;  %v765_v59 = vadd.f32 %v1668_v54, %v764_v3 }
 0x4f5   : > { %v750_v55 = vmul.f32 %v1666_v29, %v749_v52  ;;  %v777_v1 = vmul.f32 %v1670_v50, %v758_v53  ;;  %vm782_vm5 = vweird.f32 %v1670_v50 }
 0x4f6   : > { %1671 = vrcp.f32 %v759_v61  ;;  %v769_v11 = vsel %vm768_vm2, %v1668_v54, %v765_v59  ;;  %vm783_vm7 = vmor %vm781_vm6, %vm782_vm5  ;;  %v802_v13 = vand.u32 2147483648, %v759_v61  ;;  %vm796_vm10 = vweird.f32 %v759_v61 }
 0x4f7   : > { %v751_v60 = vmul.f32 %v750_v55, %v2117_v15  ;;  %v778_v48 = vsub.f32 1.0, %v777_v1  ;;  %v800_v35 = vand.u32 2147483647, %v759_v61  ;;  %v1624_v55 = vld [vmem:[%s2370_s7 + $0x6] ss:$0 sm:$0xff] }
 0x4f8   : > { %v803_v39 = vor.u32 1.1754944e-38, %v802_v13 }
 0x4f9   : > { %v753_v63 = vsel %vm752_vm14, %v2117_v15, %v751_v60  ;;  %v779_v9 = vmul.f32 %v1670_v50, %v778_v48  ;;  %v774_v15 = vsel %vm771_vm4, %v773_v14, %v769_v11  ;;  %vm801_vm12 = vcmp.eq.f32.partialorder %v800_v35, 8.507059e+37 }
 0x4fa   : > { %v756_v2 = vsel %vm754_vm15, %v755_v44, %v753_v63  ;;  %v775_v17 = vmul.f32 %v774_v15, %v2071_v42 }
 0x4fb   : > { %v2144_v5 = vmax.f32 %v756_v2, 1e-12  ;;  %v780_v4 = vadd.f32 %v1670_v50, %v779_v9 }
 0x4fc   : > { %v1672_v0 = vpop.eup %1671 }
 0x4fd   : > { %1673 = vrcp.f32 %v2144_v5  ;;  %v792_v12 = vmul.f32 %v1672_v0, %v759_v61  ;;  %v784_v25 = vsel %vm783_vm7, %v1670_v50, %v780_v4  ;;  %vm797_vm9 = vweird.f32 %v1672_v0 }
 0x4fe   : > { %v789_v31 = vsel %vm786_vm8, %v788_v30, %v784_v25  ;;  %vm798_vm11 = vmor %vm796_vm10, %vm797_vm9  ;;  %vm811_vm14 = vweird.f32 %v2144_v5  ;;  %v815_v43 = vand.u32 2147483647, %v2144_v5 }
 0x4ff   : > { %v793_v16 = vsub.f32 1.0, %v792_v12  ;;  %v2158_v42 = vmul.f32 %v789_v31, %v2082_v8  ;;  %v817_v8 = vand.u32 2147483648, %v2144_v5 }
 0x500   : > { %vm816_vm0 = vcmp.eq.f32.partialorder %v815_v43, 8.507059e+37 }
 0x501   : > { %v794_v29 = vmul.f32 %v1672_v0, %v793_v16  ;;  %v818_v49 = vor.u32 1.1754944e-38, %v817_v8 }
 0x503   : > { %v1674_v20 = vpop.eup %1673  ;;  %v795_v34 = vadd.f32 %v1672_v0, %v794_v29 }
 0x504   : > { %v807_v7 = vmul.f32 %v1674_v20, %v2144_v5  ;;  %vm812_vm13 = vweird.f32 %v1674_v20 }
 0x505   : > { %v799_v23 = vsel %vm798_vm11, %v1672_v0, %v795_v34  ;;  %vm813_vm15 = vmor %vm811_vm14, %vm812_vm13 }
 0x506   : > { %v808_v32 = vsub.f32 1.0, %v807_v7  ;;  %v804_v27 = vsel %vm801_vm12, %v803_v39, %v799_v23  ;;  %v2208_v23 = vstv %s1577_s25 }
 0x507   : > { %v2170_v45 = vmul.f32 %v804_v27, %v2090_v22  ;;  %v1623_v22 = vld [vmem:[%s2370_s7 + $0x5] ss:$0 sm:$0xff] }
 0x508   : > { %v809_v38 = vmul.f32 %v1674_v20, %v808_v32 }
 0x50a   : > { %v810_v40 = vadd.f32 %v1674_v20, %v809_v38 }
 0x50c   : > { %v814_v47 = vsel %vm813_vm15, %v1674_v20, %v810_v40 }
 0x50d   : > { %v819_v36 = vsel %vm816_vm0, %v818_v49, %v814_v47 }
 0x50e   : > { %v820_v51 = vmul.f32 %v819_v36, %v2098_v18 }
 0x51a   : > { %v2160_v37 = vpop.permute.xlu2 %1100 }
 0x522   : > { %v2147_v10 = vpop.permute.xlu1 %1104 }
 0x523   : > { %1571 = vmatmul.msk.f32.vlgmr.msrb.gmra.mxu1 %vm587_vm3, %v2147_v10  ;;  %v1113_v25 = vmul.f32 %v2147_v10, %v820_v51 }
 0x525   : > { %v1123_v29 = vsel %vm587_vm3, %v1113_v25, 0.0 }
 0x52a   : > { %v1099_v26 = vpop.permute.xlu0 %1098 }
 0x52b   : > { %v2153_v28 = vmul.f32 %v1099_v26, %v775_v17  ;;  %1568 = vmatmul.msk.f32.vlgmr.msrb.gmra.mxu0 %vm587_vm3, %v1099_v26  ;;  %1572 = vmatmul.msk.f32.vlgmr.msra.gmra.mxu1 %vm587_vm3, %v775_v17  ;;  %v1111_v26 = vmul.f32 %v2160_v37, %v2158_v42 }
 0x52d   : > { %v1114_v24 = vsel %vm587_vm3, %v2153_v28, 0.0  ;;  %v1117_v31 = vsel %vm587_vm3, %v1111_v26, 0.0 }
 0x533   : > { %1569 = vmatmul.msk.f32.gmra.mxu0 %vm587_vm3, %v2160_v37  ;;  %1573 = vmatmul.msk.f32.gmra.mxu1 %vm587_vm3, %v2158_v42  ;;  %v2172_v46 = vpop.permute.xlu0 %1102 }
 0x534   : > { %v1112_v28 = vmul.f32 %v2172_v46, %v2170_v45 }
 0x536   : > { %v1120_v32 = vsel %vm587_vm3, %v1112_v28, 0.0 }
 0x53b   : > { %1570 = vmatmul.msk.f32.gmra.mxu0 %vm587_vm3, %v2172_v46  ;;  %1574 = vmatmul.msk.f32.gmra.mxu1 %vm587_vm3, %v2170_v45 }
 0x543   : > { %1575 = vmatmul.msk.f32.gmra.mxu1 %vm587_vm3, %v820_v51 }
 0x5a0   : > { %v1173_v19 = vpop.f32.mrf.mxu1 }
 0x5a8   : > { %v1164_v52 = vpop.f32.mrf.mxu0  ;;  %v1205_v53 = vpop.f32.mrf.mxu1 }
 0x5a9   : > { %v1206_v54 = vadd.f32 %v1205_v53, %v1164_v52 }
 0x5ab   : > { %v1219_v41 = vadd.f32 %v1623_v22, %v1206_v54 }
 0x5ad   : > { %v1223_v56 = vmax.f32 %v1219_v41, 0.0 }
 0x5af   : > { %v1229_v57 = vmul.f32 %v1624_v55, %v1223_v56 }
 0x5b0   : > { %v1167_v58 = vpop.f32.mrf.mxu0  ;;  %v1208_v60 = vpop.f32.mrf.mxu1 }
 0x5b1   : > { %v1209_v18 = vadd.f32 %v1208_v60, %v1167_v58  ;;  %1255 = vrot.lane.b32.xlu1 %v1229_v57, %s1735_s16  ;;  %v1233_v9 = vsel %vm587_vm3, %v1229_v57, 0.0 }
 0x5b3   : > { %v1220_v61 = vadd.f32 %v1623_v22, %v1209_v18 }
 0x5b5   : > { %v1224_v50 = vmax.f32 %v1220_v61, 0.0 }
 0x5b7   : > { %v1230_v62 = vmul.f32 %v1624_v55, %v1224_v50 }
 0x5b8   : > { %v1170_v63 = vpop.f32.mrf.mxu0  ;;  %v1211_v44 = vpop.f32.mrf.mxu1 }
 0x5b9   : > { %v1212_v1 = vadd.f32 %v1211_v44, %v1170_v63  ;;  %1257 = vrot.lane.b32.xlu2 %v1230_v62, %s1735_s16  ;;  %v1236_v12 = vsel %vm587_vm3, %v1230_v62, 0.0 }
 0x5bb   : > { %v1221_v2 = vadd.f32 %v1623_v22, %v1212_v1 }
 0x5bd   : > { %v1225_v3 = vmax.f32 %v1221_v2, 0.0 }
 0x5bf   : > { %v1231_v5 = vmul.f32 %v1624_v55, %v1225_v3 }
 0x5c0   : > { %v1214_v48 = vpop.f32.mrf.mxu1 }
 0x5c1   : > { %v1215_v59 = vadd.f32 %v1214_v48, %v1173_v19  ;;  %1259 = vrot.lane.b32.xlu0 %v1231_v5, %s1735_s16  ;;  %v1239_v11 = vsel %vm587_vm3, %v1231_v5, 0.0 }
 0x5c3   : > { %v1222_v0 = vadd.f32 %v1623_v22, %v1215_v59 }
 0x5c5   : > { %v1226_v6 = vmax.f32 %v1222_v0, 0.0 }
 0x5c7   : > { %v1232_v33 = vmul.f32 %v1624_v55, %v1226_v6 }
 0x5c9   : > { %1261 = vrot.lane.b32.xlu1 %v1232_v33, %s1735_s16  ;;  %v1242_v20 = vsel %vm587_vm3, %v1232_v33, 0.0  ;;  %s1576_s16 = sld [smem:[#allocation2 + $0x1]] }
 0x5cf   : > { %v1246_v10 = vstv %s1576_s16 }
 0x5e2   : > { %1234 = vadd.xlane.f32.xlu2 %v1233_v9 }
 0x5ea   : > { %1240 = vadd.xlane.f32.xlu2 %v1239_v11 }
 0x5eb   : > { %1237 = vadd.xlane.f32.xlu0 %v1236_v12 }
 0x613   : > { %v1258_v14 = vpop.permute.xlu2 %1257 }
 0x614   : > { %v1270_v4 = vsel %vm587_vm3, %v1258_v14, 0.0 }
 0x615   : > { %1271 = vadd.xlane.f32.xlu0 %v1270_v4 }
 0x623   : > { %v1256_v15 = vpop.permute.xlu1 %1255 }
 0x624   : > { %v1267_v16 = vsel %vm587_vm3, %v1256_v15, 0.0 }
 0x625   : > { %1268 = vadd.xlane.f32.xlu1 %v1267_v16  ;;  %v1441_v16 = vlaneseq }
 0x62d   : > { %1243 = vadd.xlane.f32.xlu1 %v1242_v20 }
 0x633   : > { %v1260_v21 = vpop.permute.xlu0 %1259 }
 0x634   : > { %v1273_v17 = vsel %vm587_vm3, %v1260_v21, 0.0 }
 0x635   : > { %1115 = vadd.xlane.f32.xlu1 %v1114_v24  ;;  %1274 = vadd.xlane.f32.xlu2 %v1273_v17 }
 0x63b   : > { %v1262_v7 = vpop.permute.xlu1 %1261 }
 0x63c   : > { %v1276_v30 = vsel %vm587_vm3, %v1262_v7, 0.0 }
 0x63d   : > { %1124 = vadd.xlane.f32.xlu1 %v1123_v29  ;;  %1277 = vadd.xlane.f32.xlu0 %v1276_v30 }
 0x63e   : > { %1118 = vadd.xlane.f32.xlu2 %v1117_v31 }
 0x645   : > { %1121 = vadd.xlane.f32.xlu0 %v1120_v32 }
 0x655   : > { %v1235_v34 = vpop.xlane.xlu2 %1234 }
 0x656   : > { %v1247_v42 = vadd.f32 %v1246_v10, %v1235_v34 }
 0x658   : > { %v1578_v37 = vmul.f32 -1.442695, %v1247_v42  ;;  %v2277_v42 = vand.u32 127, %v1441_v16 }
 0x65a   : > { %1675 = vpow2.f32 %v1578_v37  ;;  %vm1445_vm13 = vcmp.eq.s32.totalorder %v2277_v42, 2 }
 0x65d   : > { %v1241_v8 = vpop.xlane.xlu2 %1240 }
 0x65e   : > { %v1238_v13 = vpop.xlane.xlu0 %1237  ;;  %v1249_v47 = vadd.f32 %v1246_v10, %v1241_v8 }
 0x65f   : > { %v1248_v35 = vadd.f32 %v1246_v10, %v1238_v13 }
 0x660   : > { %v1676_v40 = vpop.eup %1675  ;;  %v1580_v36 = vmul.f32 -1.442695, %v1249_v47 }
 0x661   : > { %v1579_v38 = vmul.f32 -1.442695, %v1248_v35  ;;  %v1297_v46 = vadd.f32 1.0, %v1676_v40 }
 0x663   : > { %1677 = vpow2.f32 %v1579_v38  ;;  %v1312_v59 = vand.u32 2147483648, %v1297_v46  ;;  %v1310_v0 = vand.u32 2147483647, %v1297_v46  ;;  %vm1306_vm1 = vweird.f32 %v1297_v46 }
 0x665   : > { %v1313_v15 = vor.u32 1.1754944e-38, %v1312_v59  ;;  %vm2250_vm5 = vcmp.eq.f32.partialorder %v1310_v0, 8.507059e+37 }
 0x669   : > { %v1678_v45 = vpop.eup %1677 }
 0x66a   : > { %v2211_v49 = vadd.f32 1.0, %v1678_v45 }
 0x66c   : > { %v1327_v11 = vand.u32 2147483648, %v2211_v49  ;;  %vm1321_vm6 = vweird.f32 %v2211_v49  ;;  %v1325_v26 = vand.u32 2147483647, %v2211_v49 }
 0x66e   : > { %v1328_v32 = vor.u32 1.1754944e-38, %v1327_v11  ;;  %vm1326_vm10 = vcmp.eq.f32.partialorder %v1325_v26, 8.507059e+37 }
 0x688   : > { %v1272_v39 = vpop.xlane.xlu0 %1271 }
 0x689   : > { %v1282_v27 = vadd.f32 %v2208_v23, %v1272_v39 }
 0x68b   : > { %v1583_v43 = vmul.f32 -1.442695, %v1282_v27 }
 0x68d   : > { %1679 = vpow2.f32 %v1583_v43 }
 0x68e   : > { %1681 = vrcp.f32 %v1297_v46 }
 0x68f   : > { %1683 = vrcp.f32 %v2211_v49 }
 0x690   : > { %1685 = vpow2.f32 %v1580_v36 }
 0x693   : > { %v1680_v51 = vpop.eup %1679 }
 0x694   : > { %v2214_v19 = vadd.f32 1.0, %v1680_v51  ;;  %v2217_v22 = vpop.eup %1681 }
 0x695   : > { %v2220_v54 = vpop.eup %1683  ;;  %v1302_v41 = vmul.f32 %v2217_v22, %v1297_v46  ;;  %vm1307_vm3 = vweird.f32 %v2217_v22 }
 0x696   : > { %1687 = vrcp.f32 %v2214_v19  ;;  %v1686_v56 = vpop.eup %1685  ;;  %v1317_v58 = vmul.f32 %v2220_v54, %v2211_v49  ;;  %vm1322_vm2 = vweird.f32 %v2220_v54  ;;  %vm2246_vm4 = vmor %vm1306_vm1, %vm1307_vm3  ;;  %v1407_v28 = vand.u32 2147483648, %v2214_v19 }
 0x697   : > { %v1303_v60 = vsub.f32 1.0, %v1302_v41  ;;  %v2227_v18 = vadd.f32 1.0, %v1686_v56  ;;  %vm2263_vm7 = vmor %vm1321_vm6, %vm1322_vm2  ;;  %vm1401_vm9 = vweird.f32 %v2214_v19  ;;  %v1405_v35 = vand.u32 2147483647, %v2214_v19 }
 0x698   : > { %v1269_v52 = vpop.xlane.xlu1 %1268  ;;  %v1318_v62 = vsub.f32 1.0, %v1317_v58  ;;  %v1408_v45 = vor.u32 1.1754944e-38, %v1407_v28  ;;  %v2296_v41 = vstv %s2261_s26  ;;  %vm1444_vm1 = vcmp.eq.s32.totalorder %v2277_v42, 1 }
 0x699   : > { %v1281_v53 = vadd.f32 %v2208_v23, %v1269_v52  ;;  %v1304_v1 = vmul.f32 %v2217_v22, %v1303_v60  ;;  %vm1406_vm14 = vcmp.eq.f32.partialorder %v1405_v35, 8.507059e+37  ;;  %vm1443_vm2 = vcmp.eq.s32.totalorder %v2277_v42, 0 }
 0x69a   : > { %v1319_v48 = vmul.f32 %v2220_v54, %v1318_v62  ;;  %vm1336_vm6 = vweird.f32 %v2227_v18 }
 0x69b   : > { %v1582_v55 = vmul.f32 -1.442695, %v1281_v53  ;;  %v1305_v6 = vadd.f32 %v2217_v22, %v1304_v1 }
 0x69c   : > { %v2223_v57 = vpop.eup %1687  ;;  %v1320_v14 = vadd.f32 %v2220_v54, %v1319_v48 }
 0x69d   : > { %1689 = vpow2.f32 %v1582_v55  ;;  %v1397_v61 = vmul.f32 %v2223_v57, %v2214_v19  ;;  %v1309_v17 = vsel %vm2246_vm4, %v2217_v22, %v1305_v6  ;;  %vm1402_vm8 = vweird.f32 %v2223_v57 }
 0x69e   : > { %1691 = vrcp.f32 %v2227_v18  ;;  %v1324_v34 = vsel %vm2263_vm7, %v2220_v54, %v1320_v14  ;;  %v1314_v38 = vsel %vm2250_vm5, %v1313_v15, %v1309_v17  ;;  %vm2283_vm11 = vmor %vm1401_vm9, %vm1402_vm8  ;;  %vm1458_vm4 = vcmask 64512  }
 0x69f   : > { %v1398_v3 = vsub.f32 1.0, %v1397_v61  ;;  %v1329_v8 = vsel %vm1326_vm10, %v1328_v32, %v1324_v34  ;;  %v1361_v51 = vmul.f32 5.0, %v1314_v38  ;;  %v1340_v15 = vand.u32 2147483647, %v2227_v18 }
 0x6a0   : > { %v1244_v50 = vpop.xlane.xlu1 %1243 }
 0x6a1   : > { %v1250_v63 = vadd.f32 %v1246_v10, %v1244_v50  ;;  %v1399_v33 = vmul.f32 %v2223_v57, %v1398_v3  ;;  %vm1341_vm9 = vcmp.eq.f32.partialorder %v1340_v15, 8.507059e+37 }
 0x6a3   : > { %v1690_v44 = vpop.eup %1689  ;;  %v1581_v2 = vmul.f32 -1.442695, %v1250_v63  ;;  %v1400_v31 = vadd.f32 %v2223_v57, %v1399_v33 }
 0x6a4   : > { %v2233_v5 = vadd.f32 1.0, %v1690_v44  ;;  %v2244_v4 = vpop.eup %1691 }
 0x6a5   : > { %1693 = vpow2.f32 %v1581_v2  ;;  %v1332_v13 = vmul.f32 %v2244_v4, %v2227_v18  ;;  %v1404_v43 = vsel %vm2283_vm11, %v2223_v57, %v1400_v31  ;;  %vm1337_vm5 = vweird.f32 %v2244_v4 }
 0x6a6   : > { %1695 = vrcp.f32 %v2233_v5  ;;  %v1392_v27 = vand.u32 2147483648, %v2233_v5  ;;  %v1390_v47 = vand.u32 2147483647, %v2233_v5  ;;  %vm1386_vm15 = vweird.f32 %v2233_v5  ;;  %vm1338_vm7 = vmor %vm1336_vm6, %vm1337_vm5 }
 0x6a7   : > { %v1333_v36 = vsub.f32 1.0, %v1332_v13  ;;  %v1409_v53 = vsel %vm1406_vm14, %v1408_v45, %v1404_v43 }
 0x6a8   : > { %v1275_v9 = vpop.xlane.xlu2 %1274  ;;  %v1393_v55 = vor.u32 1.1754944e-38, %v1392_v27  ;;  %v1116_v56 = vpop.xlane.xlu1 %1115  ;;  %vm1391_vm3 = vcmp.eq.f32.partialorder %v1390_v47, 8.507059e+37  ;;  %v1447_v50 = vsel %vm1445_vm13, %v1409_v53, 0.0 }
 0x6a9   : > { %v1283_v12 = vadd.f32 %v2208_v23, %v1275_v9  ;;  %v1127_v44 = vmul.f32 %v2296_v41, %v1116_v56  ;;  %v1334_v1 = vmul.f32 %v2244_v4, %v1333_v36 }
 0x6ab   : > { %v1694_v24 = vpop.eup %1693  ;;  %v1584_v25 = vmul.f32 -1.442695, %v1283_v12  ;;  %v1335_v11 = vadd.f32 %v2244_v4, %v1334_v1  ;;  %v1342_v12 = vand.u32 2147483648, %v2227_v18 }
 0x6ac   : > { %v1696_v7 = vpop.eup %1695  ;;  %v2259_v29 = vadd.f32 1.0, %v1694_v24 }
 0x6ad   : > { %v1382_v10 = vmul.f32 %v1696_v7, %v2233_v5  ;;  %1697 = vpow2.f32 %v1584_v25  ;;  %vm1387_vm12 = vweird.f32 %v1696_v7  ;;  %v1339_v21 = vsel %vm1338_vm7, %v2244_v4, %v1335_v11 }
 0x6ae   : > { %1699 = vrcp.f32 %v2259_v29  ;;  %vm1388_vm0 = vmor %vm1386_vm15, %vm1387_vm12  ;;  %v1343_v17 = vor.u32 1.1754944e-38, %v1342_v12  ;;  %v1357_v28 = vand.u32 2147483648, %v2259_v29  ;;  %vm1351_vm15 = vweird.f32 %v2259_v29 }
 0x6af   : > { %v1383_v37 = vsub.f32 1.0, %v1382_v10  ;;  %v1355_v13 = vand.u32 2147483647, %v2259_v29 }
 0x6b0   : > { %v1278_v40 = vpop.xlane.xlu0 %1277 }
 0x6b1   : > { %v1384_v46 = vmul.f32 %v1696_v7, %v1383_v37  ;;  %v1284_v49 = vadd.f32 %v2208_v23, %v1278_v40  ;;  %v1119_v54 = vpop.xlane.xlu2 %1118  ;;  %v1362_v23 = vmul.f32 5.0, %v1329_v8  ;;  %v1358_v40 = vor.u32 1.1754944e-38, %v1357_v28 }
 0x6b2   : > { %v1128_v62 = vmul.f32 %v2296_v41, %v1119_v54  ;;  %vm1356_vm5 = vcmp.eq.f32.partialorder %v1355_v13, 8.507059e+37 }
 0x6b3   : > { %v1698_v19 = vpop.eup %1697  ;;  %v1385_v22 = vadd.f32 %v1696_v7, %v1384_v46  ;;  %v1585_v52 = vmul.f32 -1.442695, %v1284_v49  ;;  %v1451_v48 = vsel %vm1444_vm1, %v1362_v23, %v1447_v50 }
 0x6b4   : > { %v1379_v57 = vadd.f32 1.0, %v1698_v19  ;;  %v2298_v58 = vpop.eup %1699  ;;  %v1455_v59 = vsel %vm1443_vm2, %v1128_v62, %v1451_v48  ;;  %v1125_v19 = vpop.xlane.xlu1 %1124 }
 0x6b5   : > { %v1389_v60 = vsel %vm1388_vm0, %v1696_v7, %v1385_v22  ;;  %1701 = vpow2.f32 %v1585_v52  ;;  %v1347_v2 = vmul.f32 %v2298_v58, %v2259_v29  ;;  %1460 = vst.msk [vmem:[%s2308_s28 + $0x8] sm:$0xff] %vm1458_vm4, %v1455_v59  ;;  %v1344_v7 = vsel %vm1341_vm9, %v1343_v17, %v1339_v21 }
 0x6b6   : > { %v1394_v61 = vsel %vm1391_vm3, %v1393_v55, %v1389_v60  ;;  %1703 = vrcp.f32 %v1379_v57  ;;  %v1422_v24 = vand.u32 2147483648, %v1379_v57  ;;  %v1420_v26 = vand.u32 2147483647, %v1379_v57 }
 0x6b7   : > { %v1446_v63 = vsel %vm1445_vm13, %v1394_v61, 0.0  ;;  %v1348_v33 = vsub.f32 1.0, %v1347_v2  ;;  %vm1416_vm10 = vweird.f32 %v1379_v57  ;;  %vm1352_vm11 = vweird.f32 %v2298_v58 }
 0x6b8   : > { %v1450_v3 = vsel %vm1444_vm1, %v1361_v51, %v1446_v63  ;;  %v1122_v32 = vpop.xlane.xlu0 %1121  ;;  %v1423_v10 = vor.u32 1.1754944e-38, %v1422_v24  ;;  %vm1421_vm14 = vcmp.eq.f32.partialorder %v1420_v26, 8.507059e+37  ;;  %v1363_v35 = vmul.f32 5.0, %v1344_v7  ;;  %vm1353_vm0 = vmor %vm1351_vm15, %vm1352_vm11 }
 0x6b9   : > { %v1454_v5 = vsel %vm1443_vm2, %v1127_v44, %v1450_v3  ;;  %v1349_v20 = vmul.f32 %v2298_v58, %v1348_v33  ;;  %v1129_v39 = vmul.f32 %v2296_v41, %v1122_v32  ;;  %v1130_v55 = vmul.f32 %v2296_v41, %v1125_v19 }
 0x6ba   : > { %1459 = vst.msk [vmem:[%s2308_s28] sm:$0xff] %vm1458_vm4, %v1454_v5 }
 0x6bb   : > { %v1702_v0 = vpop.eup %1701  ;;  %v1350_v18 = vadd.f32 %v2298_v58, %v1349_v20 }
 0x6bc   : > { %v1704_v6 = vpop.eup %1703  ;;  %v1380_v9 = vadd.f32 1.0, %v1702_v0 }
 0x6bd   : > { %v1412_v14 = vmul.f32 %v1704_v6, %v1379_v57  ;;  %vm1417_vm8 = vweird.f32 %v1704_v6  ;;  %v1354_v8 = vsel %vm1353_vm0, %v2298_v58, %v1350_v18 }
 0x6be   : > { %1705 = vrcp.f32 %v1380_v9  ;;  %vm1418_vm12 = vmor %vm1416_vm10, %vm1417_vm8  ;;  %v1437_v43 = vand.u32 2147483648, %v1380_v9  ;;  %v1435_v29 = vand.u32 2147483647, %v1380_v9  ;;  %vm1431_vm6 = vweird.f32 %v1380_v9 }
 0x6bf   : > { %v1413_v16 = vsub.f32 1.0, %v1412_v14  ;;  %v1359_v49 = vsel %vm1356_vm5, %v1358_v40, %v1354_v8 }
 0x6c0   : > { %v1438_v51 = vor.u32 1.1754944e-38, %v1437_v43  ;;  %vm1436_vm8 = vcmp.eq.f32.partialorder %v1435_v29, 8.507059e+37  ;;  %v1364_v52 = vmul.f32 5.0, %v1359_v49 }
 0x6c1   : > { %v1414_v25 = vmul.f32 %v1704_v6, %v1413_v16 }
 0x6c3   : > { %v1415_v30 = vadd.f32 %v1704_v6, %v1414_v25 }
 0x6c4   : > { %v1706_v31 = vpop.eup %1705 }
 0x6c5   : > { %v1427_v4 = vmul.f32 %v1706_v31, %v1380_v9  ;;  %v1419_v34 = vsel %vm1418_vm12, %v1704_v6, %v1415_v30  ;;  %vm1432_vm3 = vweird.f32 %v1706_v31 }
 0x6c6   : > { %v1424_v37 = vsel %vm1421_vm14, %v1423_v10, %v1419_v34  ;;  %vm1433_vm7 = vmor %vm1431_vm6, %vm1432_vm3 }
 0x6c7   : > { %v1428_v38 = vsub.f32 1.0, %v1427_v4  ;;  %v1448_v27 = vsel %vm1445_vm13, %v1424_v37, 0.0 }
 0x6c8   : > { %v1452_v45 = vsel %vm1444_vm1, %v1363_v35, %v1448_v27 }
 0x6c9   : > { %v1429_v46 = vmul.f32 %v1706_v31, %v1428_v38  ;;  %v1456_v47 = vsel %vm1443_vm2, %v1129_v39, %v1452_v45 }
 0x6ca   : > { %1461 = vst.msk [vmem:[%s2308_s28 + $0x10] sm:$0xff] %vm1458_vm4, %v1456_v47 }
 0x6cb   : > { %v1430_v36 = vadd.f32 %v1706_v31, %v1429_v46 }
 0x6cd   : > { %v1434_v22 = vsel %vm1433_vm7, %v1706_v31, %v1430_v36 }
 0x6ce   : > { %v1439_v53 = vsel %vm1436_vm8, %v1438_v51, %v1434_v22 }
 0x6cf   : > { %v1449_v54 = vsel %vm1445_vm13, %v1439_v53, 0.0 }
 0x6d0   : > { %v1453_v56 = vsel %vm1444_vm1, %v1364_v52, %v1449_v54 }
 0x6d1   : > { %v1457_v57 = vsel %vm1443_vm2, %v1130_v55, %v1453_v56 }
 0x6d2   : > { %1462 = vst.msk [vmem:[%s2308_s28 + $0x18] sm:$0xff] %vm1458_vm4, %v1457_v57 }
 0x6d3 PF: > { %s20_s30 = sadd.s32 1, %s1732_s30  }
 0x6d4   : > { %p17_p7 = scmp.ge.s32.totalorder %s20_s30, 4  }
 0x6d6   :  { %19 = sbr.rel (!%p17_p7) target bundleno = 1 (0x1), region = 94 }
 0x6db   :  { %1485 = vsyncpa [#allocation3], 1 }
 0x6dc   :  { %1487 = vsyncpa [#allocation3 + $0x1], 1 }

</bundles_post_ra>
